<compile_context>
chip_gen: v7x
topology: tpu7x:2x2x1
jax: 0.10.0
libtpu: 0.0.40
codegen_flags: <defaults>
</compile_context>

<pallas_src>
import functools

import jax
import jax.numpy as jnp
from jax.experimental import pallas as pl
from jax.experimental.pallas import tpu as pltpu


def _make_lstm_decoder_kernel(num_layers, hidden_size):
    L, H = num_layers, hidden_size

    def _cell(gates_prescaled, c_prev):
        # gates_prescaled columns: [0.5*z_i | 0.5*z_f | z_g | 0.5*z_o]
        # (the 0.5 on i/f/o is folded into the weights/bias host-side), so ONE
        # full-width tanh gives both the sigmoid halves and g.
        t = jnp.tanh(gates_prescaled)        # single EUP pass over (1, 4H)
        sig = 0.5 * t + 0.5                  # full-width VPU; == sigmoid(z_ifo)
        i_g = sig[:, 0:H]
        f_g = sig[:, H:2 * H]
        o_g = sig[:, 3 * H:4 * H]
        g_g = t[:, 2 * H:3 * H]              # == tanh(z_g)
        c_new = f_g * c_prev + i_g * g_g
        h_new = o_g * jnp.tanh(c_new)        # second (narrow) EUP pass
        return h_new, c_new

    def kernel(x_ref, h0_ref, c0_ref, *rest):
        # ---- unpack refs: layer-0 weights, layers>=1 weights, head, outputs --
        w_ih0 = rest[0][...]                           # (In, 4H) f32 (off-path)
        w_hh0 = rest[1][...]                           # (H, 4H)  bf16
        b0 = rest[2][...]                              # (1, 4H)  f32
        w_ih_l = [rest[3 + 3 * (l - 1) + 0][...] for l in range(1, L)]  # bf16
        w_hh_l = [rest[3 + 3 * (l - 1) + 1][...] for l in range(1, L)]  # bf16
        b_l = [rest[3 + 3 * (l - 1) + 2][...] for l in range(1, L)]     # f32
        base = 3 + 3 * (L - 1)
        w_lin = rest[base][...]                        # (H, O_pad) f32
        b_lin = rest[base + 1][...]                    # (1, O_pad) f32
        out_ref = rest[base + 2]
        hn_ref = rest[base + 3]
        cn_ref = rest[base + 4]

        S = x_ref.shape[0]

        # ---- state carried as values (vregs); written back once at the end --
        h = [h0_ref[l:l + 1, :] for l in range(L)]
        c = [c0_ref[l:l + 1, :] for l in range(L)]

        # ---- layer-0 input projection for all timesteps, off the serial path:
        # one (S, In) x (In, 4H) f32 MXU matmul, bias folded in.
        gx0 = jnp.dot(x_ref[...], w_ih0, preferred_element_type=jnp.float32) + b0

        seq = []
        for t in range(S):  # static trip count -> fully unrolled at trace time
            # layer 0: only the (bf16) recurrent dot remains on the crit path.
            gates = gx0[t:t + 1, :] + jnp.dot(
                h[0].astype(jnp.bfloat16), w_hh0,
                preferred_element_type=jnp.float32)
            h[0], c[0] = _cell(gates, c[0])
            layer_in = h[0]

            # layers >= 1: two independent bf16 dots (no lane concat).  The
            # recurrent dot uses last step's h[l], so the scheduler can issue
            # it while layer l-1's cell is still finishing.
            for l in range(1, L):
                g_rec = jnp.dot(h[l].astype(jnp.bfloat16), w_hh_l[l - 1],
                                preferred_element_type=jnp.float32)
                g_in = jnp.dot(layer_in.astype(jnp.bfloat16), w_ih_l[l - 1],
                               preferred_element_type=jnp.float32)
                gates = g_in + g_rec + b_l[l - 1]
                h[l], c[l] = _cell(gates, c[l])
                layer_in = h[l]

            seq.append(layer_in)  # last-layer hidden at step t (stays in vregs)

        # Linear head on every timestep's last-layer hidden (== torch
        # out[:, -1, :], since the torch batch dim has size 1).  Output N dim
        # is lane-dense (padded to a 128 multiple host-side) -> unmasked vst.
        seq_all = jnp.concatenate(seq, axis=0)  # (S, H)
        out_ref[...] = (
            jnp.dot(seq_all, w_lin, preferred_element_type=jnp.float32) + b_lin
        )

        # Final states written exactly once.
        hn_ref[...] = jnp.concatenate(h, axis=0)
        cn_ref[...] = jnp.concatenate(c, axis=0)

    return kernel


def lstm_decoder_forward(x, h0, c0, params, *, num_layers, hidden_size, output_size):
    """x: (S, input_size); h0, c0: (num_layers, 1, hidden_size).

    params: per-layer 'w_ih_l', 'w_hh_l', 'b_ih_l', 'b_hh_l' in PyTorch layout
    plus 'w_lin' (O, H) and 'b_lin' (O,).
    Returns (out (S, O), (hn (L, 1, H), cn (L, 1, H))).
    """
    S = x.shape[0]
    L, H, O = num_layers, hidden_size, output_size
    O_pad = ((O + 127) // 128) * 128  # lane-dense head width

    # ---- weight prep (plain JAX, once under jit; not the hot path) ----------
    # Column scale folds the /2 of sigmoid(z)=0.5*(tanh(z/2)+1) into the i/f/o
    # gate columns; g (tanh) columns stay at 1.0.  Applied identically to the
    # input weights, recurrent weights and bias of every layer so the gate
    # pre-activations the kernel sees are already "tanh-ready".
    col_scale = jnp.concatenate([
        jnp.full((2 * H,), 0.5, jnp.float32),   # i, f
        jnp.ones((H,), jnp.float32),            # g
        jnp.full((H,), 0.5, jnp.float32),       # o
    ]).reshape(1, 4 * H)

    def prep_w(w_t, dtype):  # w_t: (K, 4H) transposed weight
        return (w_t * col_scale).astype(dtype)

    def prep_b(l):
        return (params[f"b_ih_{l}"] + params[f"b_hh_{l}"]).reshape(1, 4 * H) * col_scale

    # Layer 0: input side stays f32 (off critical path, keeps accuracy);
    # recurrent side is bf16 (critical path MXU operand).
    flat_layer_args = [
        prep_w(params["w_ih_0"].T, jnp.float32),      # (In, 4H) f32
        prep_w(params["w_hh_0"].T, jnp.bfloat16),     # (H, 4H)  bf16
        prep_b(0),                                    # (1, 4H)  f32
    ]
    for l in range(1, L):
        flat_layer_args += [
            prep_w(params[f"w_ih_{l}"].T, jnp.bfloat16),  # (H, 4H) bf16
            prep_w(params[f"w_hh_{l}"].T, jnp.bfloat16),  # (H, 4H) bf16
            prep_b(l),                                    # (1, 4H) f32
        ]

    # Lane-dense linear head: zero-pad N to a 128 multiple, slice outside.
    w_lin_T = jnp.zeros((H, O_pad), jnp.float32).at[:, :O].set(params["w_lin"].T)
    b_lin_p = jnp.zeros((1, O_pad), jnp.float32).at[:, :O].set(
        params["b_lin"].reshape(1, O))

    h0_2d = h0.reshape(L, H)
    c0_2d = c0.reshape(L, H)

    vmem = pl.BlockSpec(memory_space=pltpu.MemorySpace.VMEM)
    n_inputs = 3 + len(flat_layer_args) + 2

    kernel = _make_lstm_decoder_kernel(L, H)

    out_pad, hn, cn = pl.pallas_call(
        kernel,
        out_shape=(
            jax.ShapeDtypeStruct((S, O_pad), jnp.float32),
            jax.ShapeDtypeStruct((L, H), jnp.float32),
            jax.ShapeDtypeStruct((L, H), jnp.float32),
        ),
        in_specs=[vmem] * n_inputs,
        out_specs=(vmem, vmem, vmem),
    )(x, h0_2d, c0_2d, *flat_layer_args, w_lin_T, b_lin_p)

    out = out_pad[:, :O]
    return out, (hn.reshape(L, 1, H), cn.reshape(L, 1, H))


def lstm_decoder_ref(x, h0, c0, params, *, num_layers, hidden_size, output_size):
    """Pure-JAX f32 reference matching PyTorch nn.LSTM + nn.Linear semantics."""
    S = x.shape[0]
    L, H = num_layers, hidden_size
    h = [h0[l] for l in range(L)]  # each (1, H)
    c = [c0[l] for l in range(L)]
    seq = []
    for t in range(S):
        layer_in = x[t:t + 1, :]
        for l in range(L):
            w_ih = params[f"w_ih_{l}"]
            w_hh = params[f"w_hh_{l}"]
            b = params[f"b_ih_{l}"] + params[f"b_hh_{l}"]
            gates = layer_in @ w_ih.T + h[l] @ w_hh.T + b
            i_g = jax.nn.sigmoid(gates[:, 0:H])
            f_g = jax.nn.sigmoid(gates[:, H:2 * H])
            g_g = jnp.tanh(gates[:, 2 * H:3 * H])
            o_g = jax.nn.sigmoid(gates[:, 3 * H:4 * H])
            c[l] = f_g * c[l] + i_g * g_g
            h[l] = o_g * jnp.tanh(c[l])
            layer_in = h[l]
        seq.append(layer_in)
    seq = jnp.concatenate(seq, axis=0)  # (S, H)
    out = seq @ params["w_lin"].T + params["b_lin"]
    hn = jnp.stack(h, axis=0)  # (L, 1, H)
    cn = jnp.stack(c, axis=0)
    return out, (hn, cn)


def init_params(key, input_size, hidden_size, output_size, num_layers):
    """Deterministic init mimicking PyTorch's U(-1/sqrt(H), 1/sqrt(H))."""
    H = hidden_size
    k = 1.0 / jnp.sqrt(jnp.float32(H))
    params = {}
    for l in range(num_layers):
        in_l = input_size if l == 0 else H
        key, k1, k2, k3, k4 = jax.random.split(key, 5)
        params[f"w_ih_{l}"] = jax.random.uniform(k1, (4 * H, in_l), jnp.float32, -k, k)
        params[f"w_hh_{l}"] = jax.random.uniform(k2, (4 * H, H), jnp.float32, -k, k)
        params[f"b_ih_{l}"] = jax.random.uniform(k3, (4 * H,), jnp.float32, -k, k)
        params[f"b_hh_{l}"] = jax.random.uniform(k4, (4 * H,), jnp.float32, -k, k)
    key, k5, k6 = jax.random.split(key, 3)
    params["w_lin"] = jax.random.uniform(k5, (output_size, H), jnp.float32, -k, k)
    params["b_lin"] = jax.random.uniform(k6, (output_size,), jnp.float32, -k, k)
    return params


if __name__ == "__main__":
    INPUT_SIZE = 16
    HIDDEN_SIZE = 32
    OUTPUT_SIZE = 16
    NUM_LAYERS = 2
    SEQ = 8  # x_input.shape[0]

    root = jax.random.PRNGKey(0)
    kp, kx, kh, kc = jax.random.split(root, 4)

    params = init_params(kp, INPUT_SIZE, HIDDEN_SIZE, OUTPUT_SIZE, NUM_LAYERS)
    x_input = jax.random.normal(kx, (SEQ, INPUT_SIZE), jnp.float32)
    h0 = jax.random.normal(kh, (NUM_LAYERS, 1, HIDDEN_SIZE), jnp.float32)
    c0 = jax.random.normal(kc, (NUM_LAYERS, 1, HIDDEN_SIZE), jnp.float32)

    fwd = functools.partial(
        lstm_decoder_forward,
        num_layers=NUM_LAYERS,
        hidden_size=HIDDEN_SIZE,
        output_size=OUTPUT_SIZE,
    )
    out, (hn, cn) = jax.jit(fwd)(x_input, h0, c0, params)
    jax.block_until_ready((out, hn, cn))

    # Sanity check against a pure-JAX f32 reference of the PyTorch forward.
    # Tolerance is loosened vs the previous revision because the recurrent
    # matmul operands are now bf16 (f32 accumulation); a real wiring/gate-order
    # bug would produce O(1) errors and still be caught.
    out_r, (hn_r, cn_r) = lstm_decoder_ref(
        x_input, h0, c0, params,
        num_layers=NUM_LAYERS, hidden_size=HIDDEN_SIZE, output_size=OUTPUT_SIZE,
    )
    assert out.shape == (SEQ, OUTPUT_SIZE)
    assert hn.shape == (NUM_LAYERS, 1, HIDDEN_SIZE) and cn.shape == (NUM_LAYERS, 1, HIDDEN_SIZE)
    assert jnp.allclose(out, out_r, atol=3e-2, rtol=3e-2)
    assert jnp.allclose(hn, hn_r, atol=3e-2, rtol=3e-2)
    assert jnp.allclose(cn, cn_r, atol=3e-2, rtol=3e-2)

    print("KERNEL_OK")
</pallas_src>

<mosaic_0001>
module attributes {stable_mosaic.version = 11 : i64} {
  func.func @kernel(%arg0: memref<8x16xf32, #tpu.memory_space<vmem>>, %arg1: memref<2x32xf32, #tpu.memory_space<vmem>>, %arg2: memref<2x32xf32, #tpu.memory_space<vmem>>, %arg3: memref<16x128xf32, #tpu.memory_space<vmem>>, %arg4: memref<32x128xbf16, #tpu.memory_space<vmem>>, %arg5: memref<1x128xf32, #tpu.memory_space<vmem>>, %arg6: memref<32x128xbf16, #tpu.memory_space<vmem>>, %arg7: memref<32x128xbf16, #tpu.memory_space<vmem>>, %arg8: memref<1x128xf32, #tpu.memory_space<vmem>>, %arg9: memref<32x128xf32, #tpu.memory_space<vmem>>, %arg10: memref<1x128xf32, #tpu.memory_space<vmem>>, %arg11: memref<8x128xf32, #tpu.memory_space<vmem>>, %arg12: memref<2x32xf32, #tpu.memory_space<vmem>>, %arg13: memref<2x32xf32, #tpu.memory_space<vmem>>) attributes {dimension_semantics = [], scalar_prefetch = 0 : i64, scratch_operands = 0 : i64, tpu.core_type = #tpu.core_type<tc>} {
    %c0 = arith.constant 0 : index
    %c0_0 = arith.constant 0 : index
    %0 = vector.load %arg3[%c0, %c0_0] : memref<16x128xf32, #tpu.memory_space<vmem>>, vector<16x128xf32>
    %c0_1 = arith.constant 0 : index
    %c0_2 = arith.constant 0 : index
    %1 = vector.load %arg4[%c0_1, %c0_2] : memref<32x128xbf16, #tpu.memory_space<vmem>>, vector<32x128xbf16>
    %c0_3 = arith.constant 0 : index
    %c0_4 = arith.constant 0 : index
    %2 = vector.load %arg5[%c0_3, %c0_4] : memref<1x128xf32, #tpu.memory_space<vmem>>, vector<1x128xf32>
    %c0_5 = arith.constant 0 : index
    %c0_6 = arith.constant 0 : index
    %3 = vector.load %arg6[%c0_5, %c0_6] : memref<32x128xbf16, #tpu.memory_space<vmem>>, vector<32x128xbf16>
    %c0_7 = arith.constant 0 : index
    %c0_8 = arith.constant 0 : index
    %4 = vector.load %arg7[%c0_7, %c0_8] : memref<32x128xbf16, #tpu.memory_space<vmem>>, vector<32x128xbf16>
    %c0_9 = arith.constant 0 : index
    %c0_10 = arith.constant 0 : index
    %5 = vector.load %arg8[%c0_9, %c0_10] : memref<1x128xf32, #tpu.memory_space<vmem>>, vector<1x128xf32>
    %c0_11 = arith.constant 0 : index
    %c0_12 = arith.constant 0 : index
    %6 = vector.load %arg9[%c0_11, %c0_12] : memref<32x128xf32, #tpu.memory_space<vmem>>, vector<32x128xf32>
    %c0_13 = arith.constant 0 : index
    %c0_14 = arith.constant 0 : index
    %7 = vector.load %arg10[%c0_13, %c0_14] : memref<1x128xf32, #tpu.memory_space<vmem>>, vector<1x128xf32>
    %c0_15 = arith.constant 0 : index
    %c0_16 = arith.constant 0 : index
    %8 = vector.load %arg1[%c0_15, %c0_16] : memref<2x32xf32, #tpu.memory_space<vmem>>, vector<1x32xf32>
    %c1 = arith.constant 1 : index
    %c0_17 = arith.constant 0 : index
    %9 = vector.load %arg1[%c1, %c0_17] : memref<2x32xf32, #tpu.memory_space<vmem>>, vector<1x32xf32>
    %c0_18 = arith.constant 0 : index
    %c0_19 = arith.constant 0 : index
    %10 = vector.load %arg2[%c0_18, %c0_19] : memref<2x32xf32, #tpu.memory_space<vmem>>, vector<1x32xf32>
    %c1_20 = arith.constant 1 : index
    %c0_21 = arith.constant 0 : index
    %11 = vector.load %arg2[%c1_20, %c0_21] : memref<2x32xf32, #tpu.memory_space<vmem>>, vector<1x32xf32>
    %c0_22 = arith.constant 0 : index
    %c0_23 = arith.constant 0 : index
    %12 = vector.load %arg0[%c0_22, %c0_23] : memref<8x16xf32, #tpu.memory_space<vmem>>, vector<8x16xf32>
    %cst = arith.constant dense<0.000000e+00> : vector<8x128xf32>
    %13 = tpu.matmul %12, %0, %cst {dimension_numbers = #tpu.dot_dimension_numbers<[1], [0], [0], [1], [0, 0, 1, 1], [], []>} : vector<8x16xf32>, vector<16x128xf32>, vector<8x128xf32> -> vector<8x128xf32>
    %14 = vector.broadcast %2 : vector<1x128xf32> to vector<8x128xf32>
    %15 = arith.addf %13, %14 : vector<8x128xf32>
    %16 = vector.extract_strided_slice %15 {offsets = [0, 0], sizes = [1, 128], strides = [1, 1]} : vector<8x128xf32> to vector<1x128xf32>
    %17 = arith.truncf %8 : vector<1x32xf32> to vector<1x32xbf16>
    %cst_24 = arith.constant dense<0.000000e+00> : vector<1x128xf32>
    %18 = tpu.matmul %17, %1, %cst_24 {dimension_numbers = #tpu.dot_dimension_numbers<[1], [0], [0], [1], [0, 0, 1, 1], [], []>} : vector<1x32xbf16>, vector<32x128xbf16>, vector<1x128xf32> -> vector<1x128xf32>
    %19 = arith.addf %16, %18 : vector<1x128xf32>
    %20 = math.tanh %19 : vector<1x128xf32>
    %cst_25 = arith.constant 5.000000e-01 : f32
    %21 = vector.broadcast %cst_25 : f32 to vector<1x128xf32>
    %22 = arith.mulf %21, %20 : vector<1x128xf32>
    %cst_26 = arith.constant 5.000000e-01 : f32
    %23 = vector.broadcast %cst_26 : f32 to vector<1x128xf32>
    %24 = arith.addf %22, %23 : vector<1x128xf32>
    %25 = vector.extract_strided_slice %24 {offsets = [0, 0], sizes = [1, 32], strides = [1, 1]} : vector<1x128xf32> to vector<1x32xf32>
    %26 = vector.extract_strided_slice %24 {offsets = [0, 32], sizes = [1, 32], strides = [1, 1]} : vector<1x128xf32> to vector<1x32xf32>
    %27 = vector.extract_strided_slice %24 {offsets = [0, 96], sizes = [1, 32], strides = [1, 1]} : vector<1x128xf32> to vector<1x32xf32>
    %28 = vector.extract_strided_slice %20 {offsets = [0, 64], sizes = [1, 32], strides = [1, 1]} : vector<1x128xf32> to vector<1x32xf32>
    %29 = arith.mulf %26, %10 : vector<1x32xf32>
    %30 = arith.mulf %25, %28 : vector<1x32xf32>
    %31 = arith.addf %29, %30 : vector<1x32xf32>
    %32 = math.tanh %31 : vector<1x32xf32>
    %33 = arith.mulf %27, %32 : vector<1x32xf32>
    %34 = arith.truncf %9 : vector<1x32xf32> to vector<1x32xbf16>
    %cst_27 = arith.constant dense<0.000000e+00> : vector<1x128xf32>
    %35 = tpu.matmul %34, %4, %cst_27 {dimension_numbers = #tpu.dot_dimension_numbers<[1], [0], [0], [1], [0, 0, 1, 1], [], []>} : vector<1x32xbf16>, vector<32x128xbf16>, vector<1x128xf32> -> vector<1x128xf32>
    %36 = arith.truncf %33 : vector<1x32xf32> to vector<1x32xbf16>
    %cst_28 = arith.constant dense<0.000000e+00> : vector<1x128xf32>
    %37 = tpu.matmul %36, %3, %cst_28 {dimension_numbers = #tpu.dot_dimension_numbers<[1], [0], [0], [1], [0, 0, 1, 1], [], []>} : vector<1x32xbf16>, vector<32x128xbf16>, vector<1x128xf32> -> vector<1x128xf32>
    %38 = arith.addf %37, %35 : vector<1x128xf32>
    %39 = arith.addf %38, %5 : vector<1x128xf32>
    %40 = math.tanh %39 : vector<1x128xf32>
    %cst_29 = arith.constant 5.000000e-01 : f32
    %41 = vector.broadcast %cst_29 : f32 to vector<1x128xf32>
    %42 = arith.mulf %41, %40 : vector<1x128xf32>
    %cst_30 = arith.constant 5.000000e-01 : f32
    %43 = vector.broadcast %cst_30 : f32 to vector<1x128xf32>
    %44 = arith.addf %42, %43 : vector<1x128xf32>
    %45 = vector.extract_strided_slice %44 {offsets = [0, 0], sizes = [1, 32], strides = [1, 1]} : vector<1x128xf32> to vector<1x32xf32>
    %46 = vector.extract_strided_slice %44 {offsets = [0, 32], sizes = [1, 32], strides = [1, 1]} : vector<1x128xf32> to vector<1x32xf32>
    %47 = vector.extract_strided_slice %44 {offsets = [0, 96], sizes = [1, 32], strides = [1, 1]} : vector<1x128xf32> to vector<1x32xf32>
    %48 = vector.extract_strided_slice %40 {offsets = [0, 64], sizes = [1, 32], strides = [1, 1]} : vector<1x128xf32> to vector<1x32xf32>
    %49 = arith.mulf %46, %11 : vector<1x32xf32>
    %50 = arith.mulf %45, %48 : vector<1x32xf32>
    %51 = arith.addf %49, %50 : vector<1x32xf32>
    %52 = math.tanh %51 : vector<1x32xf32>
    %53 = arith.mulf %47, %52 : vector<1x32xf32>
    %54 = vector.extract_strided_slice %15 {offsets = [1, 0], sizes = [1, 128], strides = [1, 1]} : vector<8x128xf32> to vector<1x128xf32>
    %55 = arith.truncf %33 : vector<1x32xf32> to vector<1x32xbf16>
    %cst_31 = arith.constant dense<0.000000e+00> : vector<1x128xf32>
    %56 = tpu.matmul %55, %1, %cst_31 {dimension_numbers = #tpu.dot_dimension_numbers<[1], [0], [0], [1], [0, 0, 1, 1], [], []>} : vector<1x32xbf16>, vector<32x128xbf16>, vector<1x128xf32> -> vector<1x128xf32>
    %57 = arith.addf %54, %56 : vector<1x128xf32>
    %58 = math.tanh %57 : vector<1x128xf32>
    %cst_32 = arith.constant 5.000000e-01 : f32
    %59 = vector.broadcast %cst_32 : f32 to vector<1x128xf32>
    %60 = arith.mulf %59, %58 : vector<1x128xf32>
    %cst_33 = arith.constant 5.000000e-01 : f32
    %61 = vector.broadcast %cst_33 : f32 to vector<1x128xf32>
    %62 = arith.addf %60, %61 : vector<1x128xf32>
    %63 = vector.extract_strided_slice %62 {offsets = [0, 0], sizes = [1, 32], strides = [1, 1]} : vector<1x128xf32> to vector<1x32xf32>
    %64 = vector.extract_strided_slice %62 {offsets = [0, 32], sizes = [1, 32], strides = [1, 1]} : vector<1x128xf32> to vector<1x32xf32>
    %65 = vector.extract_strided_slice %62 {offsets = [0, 96], sizes = [1, 32], strides = [1, 1]} : vector<1x128xf32> to vector<1x32xf32>
    %66 = vector.extract_strided_slice %58 {offsets = [0, 64], sizes = [1, 32], strides = [1, 1]} : vector<1x128xf32> to vector<1x32xf32>
    %67 = arith.mulf %64, %31 : vector<1x32xf32>
    %68 = arith.mulf %63, %66 : vector<1x32xf32>
    %69 = arith.addf %67, %68 : vector<1x32xf32>
    %70 = math.tanh %69 : vector<1x32xf32>
    %71 = arith.mulf %65, %70 : vector<1x32xf32>
    %72 = arith.truncf %53 : vector<1x32xf32> to vector<1x32xbf16>
    %cst_34 = arith.constant dense<0.000000e+00> : vector<1x128xf32>
    %73 = tpu.matmul %72, %4, %cst_34 {dimension_numbers = #tpu.dot_dimension_numbers<[1], [0], [0], [1], [0, 0, 1, 1], [], []>} : vector<1x32xbf16>, vector<32x128xbf16>, vector<1x128xf32> -> vector<1x128xf32>
    %74 = arith.truncf %71 : vector<1x32xf32> to vector<1x32xbf16>
    %cst_35 = arith.constant dense<0.000000e+00> : vector<1x128xf32>
    %75 = tpu.matmul %74, %3, %cst_35 {dimension_numbers = #tpu.dot_dimension_numbers<[1], [0], [0], [1], [0, 0, 1, 1], [], []>} : vector<1x32xbf16>, vector<32x128xbf16>, vector<1x128xf32> -> vector<1x128xf32>
    %76 = arith.addf %75, %73 : vector<1x128xf32>
    %77 = arith.addf %76, %5 : vector<1x128xf32>
    %78 = math.tanh %77 : vector<1x128xf32>
    %cst_36 = arith.constant 5.000000e-01 : f32
    %79 = vector.broadcast %cst_36 : f32 to vector<1x128xf32>
    %80 = arith.mulf %79, %78 : vector<1x128xf32>
    %cst_37 = arith.constant 5.000000e-01 : f32
    %81 = vector.broadcast %cst_37 : f32 to vector<1x128xf32>
    %82 = arith.addf %80, %81 : vector<1x128xf32>
    %83 = vector.extract_strided_slice %82 {offsets = [0, 0], sizes = [1, 32], strides = [1, 1]} : vector<1x128xf32> to vector<1x32xf32>
    %84 = vector.extract_strided_slice %82 {offsets = [0, 32], sizes = [1, 32], strides = [1, 1]} : vector<1x128xf32> to vector<1x32xf32>
    %85 = vector.extract_strided_slice %82 {offsets = [0, 96], sizes = [1, 32], strides = [1, 1]} : vector<1x128xf32> to vector<1x32xf32>
    %86 = vector.extract_strided_slice %78 {offsets = [0, 64], sizes = [1, 32], strides = [1, 1]} : vector<1x128xf32> to vector<1x32xf32>
    %87 = arith.mulf %84, %51 : vector<1x32xf32>
    %88 = arith.mulf %83, %86 : vector<1x32xf32>
    %89 = arith.addf %87, %88 : vector<1x32xf32>
    %90 = math.tanh %89 : vector<1x32xf32>
    %91 = arith.mulf %85, %90 : vector<1x32xf32>
    %92 = vector.extract_strided_slice %15 {offsets = [2, 0], sizes = [1, 128], strides = [1, 1]} : vector<8x128xf32> to vector<1x128xf32>
    %93 = arith.truncf %71 : vector<1x32xf32> to vector<1x32xbf16>
    %cst_38 = arith.constant dense<0.000000e+00> : vector<1x128xf32>
    %94 = tpu.matmul %93, %1, %cst_38 {dimension_numbers = #tpu.dot_dimension_numbers<[1], [0], [0], [1], [0, 0, 1, 1], [], []>} : vector<1x32xbf16>, vector<32x128xbf16>, vector<1x128xf32> -> vector<1x128xf32>
    %95 = arith.addf %92, %94 : vector<1x128xf32>
    %96 = math.tanh %95 : vector<1x128xf32>
    %cst_39 = arith.constant 5.000000e-01 : f32
    %97 = vector.broadcast %cst_39 : f32 to vector<1x128xf32>
    %98 = arith.mulf %97, %96 : vector<1x128xf32>
    %cst_40 = arith.constant 5.000000e-01 : f32
    %99 = vector.broadcast %cst_40 : f32 to vector<1x128xf32>
    %100 = arith.addf %98, %99 : vector<1x128xf32>
    %101 = vector.extract_strided_slice %100 {offsets = [0, 0], sizes = [1, 32], strides = [1, 1]} : vector<1x128xf32> to vector<1x32xf32>
    %102 = vector.extract_strided_slice %100 {offsets = [0, 32], sizes = [1, 32], strides = [1, 1]} : vector<1x128xf32> to vector<1x32xf32>
    %103 = vector.extract_strided_slice %100 {offsets = [0, 96], sizes = [1, 32], strides = [1, 1]} : vector<1x128xf32> to vector<1x32xf32>
    %104 = vector.extract_strided_slice %96 {offsets = [0, 64], sizes = [1, 32], strides = [1, 1]} : vector<1x128xf32> to vector<1x32xf32>
    %105 = arith.mulf %102, %69 : vector<1x32xf32>
    %106 = arith.mulf %101, %104 : vector<1x32xf32>
    %107 = arith.addf %105, %106 : vector<1x32xf32>
    %108 = math.tanh %107 : vector<1x32xf32>
    %109 = arith.mulf %103, %108 : vector<1x32xf32>
    %110 = arith.truncf %91 : vector<1x32xf32> to vector<1x32xbf16>
    %cst_41 = arith.constant dense<0.000000e+00> : vector<1x128xf32>
    %111 = tpu.matmul %110, %4, %cst_41 {dimension_numbers = #tpu.dot_dimension_numbers<[1], [0], [0], [1], [0, 0, 1, 1], [], []>} : vector<1x32xbf16>, vector<32x128xbf16>, vector<1x128xf32> -> vector<1x128xf32>
    %112 = arith.truncf %109 : vector<1x32xf32> to vector<1x32xbf16>
    %cst_42 = arith.constant dense<0.000000e+00> : vector<1x128xf32>
    %113 = tpu.matmul %112, %3, %cst_42 {dimension_numbers = #tpu.dot_dimension_numbers<[1], [0], [0], [1], [0, 0, 1, 1], [], []>} : vector<1x32xbf16>, vector<32x128xbf16>, vector<1x128xf32> -> vector<1x128xf32>
    %114 = arith.addf %113, %111 : vector<1x128xf32>
    %115 = arith.addf %114, %5 : vector<1x128xf32>
    %116 = math.tanh %115 : vector<1x128xf32>
    %cst_43 = arith.constant 5.000000e-01 : f32
    %117 = vector.broadcast %cst_43 : f32 to vector<1x128xf32>
    %118 = arith.mulf %117, %116 : vector<1x128xf32>
    %cst_44 = arith.constant 5.000000e-01 : f32
    %119 = vector.broadcast %cst_44 : f32 to vector<1x128xf32>
    %120 = arith.addf %118, %119 : vector<1x128xf32>
    %121 = vector.extract_strided_slice %120 {offsets = [0, 0], sizes = [1, 32], strides = [1, 1]} : vector<1x128xf32> to vector<1x32xf32>
    %122 = vector.extract_strided_slice %120 {offsets = [0, 32], sizes = [1, 32], strides = [1, 1]} : vector<1x128xf32> to vector<1x32xf32>
    %123 = vector.extract_strided_slice %120 {offsets = [0, 96], sizes = [1, 32], strides = [1, 1]} : vector<1x128xf32> to vector<1x32xf32>
    %124 = vector.extract_strided_slice %116 {offsets = [0, 64], sizes = [1, 32], strides = [1, 1]} : vector<1x128xf32> to vector<1x32xf32>
    %125 = arith.mulf %122, %89 : vector<1x32xf32>
    %126 = arith.mulf %121, %124 : vector<1x32xf32>
    %127 = arith.addf %125, %126 : vector<1x32xf32>
    %128 = math.tanh %127 : vector<1x32xf32>
    %129 = arith.mulf %123, %128 : vector<1x32xf32>
    %130 = vector.extract_strided_slice %15 {offsets = [3, 0], sizes = [1, 128], strides = [1, 1]} : vector<8x128xf32> to vector<1x128xf32>
    %131 = arith.truncf %109 : vector<1x32xf32> to vector<1x32xbf16>
    %cst_45 = arith.constant dense<0.000000e+00> : vector<1x128xf32>
    %132 = tpu.matmul %131, %1, %cst_45 {dimension_numbers = #tpu.dot_dimension_numbers<[1], [0], [0], [1], [0, 0, 1, 1], [], []>} : vector<1x32xbf16>, vector<32x128xbf16>, vector<1x128xf32> -> vector<1x128xf32>
    %133 = arith.addf %130, %132 : vector<1x128xf32>
    %134 = math.tanh %133 : vector<1x128xf32>
    %cst_46 = arith.constant 5.000000e-01 : f32
    %135 = vector.broadcast %cst_46 : f32 to vector<1x128xf32>
    %136 = arith.mulf %135, %134 : vector<1x128xf32>
    %cst_47 = arith.constant 5.000000e-01 : f32
    %137 = vector.broadcast %cst_47 : f32 to vector<1x128xf32>
    %138 = arith.addf %136, %137 : vector<1x128xf32>
    %139 = vector.extract_strided_slice %138 {offsets = [0, 0], sizes = [1, 32], strides = [1, 1]} : vector<1x128xf32> to vector<1x32xf32>
    %140 = vector.extract_strided_slice %138 {offsets = [0, 32], sizes = [1, 32], strides = [1, 1]} : vector<1x128xf32> to vector<1x32xf32>
    %141 = vector.extract_strided_slice %138 {offsets = [0, 96], sizes = [1, 32], strides = [1, 1]} : vector<1x128xf32> to vector<1x32xf32>
    %142 = vector.extract_strided_slice %134 {offsets = [0, 64], sizes = [1, 32], strides = [1, 1]} : vector<1x128xf32> to vector<1x32xf32>
    %143 = arith.mulf %140, %107 : vector<1x32xf32>
    %144 = arith.mulf %139, %142 : vector<1x32xf32>
    %145 = arith.addf %143, %144 : vector<1x32xf32>
    %146 = math.tanh %145 : vector<1x32xf32>
    %147 = arith.mulf %141, %146 : vector<1x32xf32>
    %148 = arith.truncf %129 : vector<1x32xf32> to vector<1x32xbf16>
    %cst_48 = arith.constant dense<0.000000e+00> : vector<1x128xf32>
    %149 = tpu.matmul %148, %4, %cst_48 {dimension_numbers = #tpu.dot_dimension_numbers<[1], [0], [0], [1], [0, 0, 1, 1], [], []>} : vector<1x32xbf16>, vector<32x128xbf16>, vector<1x128xf32> -> vector<1x128xf32>
    %150 = arith.truncf %147 : vector<1x32xf32> to vector<1x32xbf16>
    %cst_49 = arith.constant dense<0.000000e+00> : vector<1x128xf32>
    %151 = tpu.matmul %150, %3, %cst_49 {dimension_numbers = #tpu.dot_dimension_numbers<[1], [0], [0], [1], [0, 0, 1, 1], [], []>} : vector<1x32xbf16>, vector<32x128xbf16>, vector<1x128xf32> -> vector<1x128xf32>
    %152 = arith.addf %151, %149 : vector<1x128xf32>
    %153 = arith.addf %152, %5 : vector<1x128xf32>
    %154 = math.tanh %153 : vector<1x128xf32>
    %cst_50 = arith.constant 5.000000e-01 : f32
    %155 = vector.broadcast %cst_50 : f32 to vector<1x128xf32>
    %156 = arith.mulf %155, %154 : vector<1x128xf32>
    %cst_51 = arith.constant 5.000000e-01 : f32
    %157 = vector.broadcast %cst_51 : f32 to vector<1x128xf32>
    %158 = arith.addf %156, %157 : vector<1x128xf32>
    %159 = vector.extract_strided_slice %158 {offsets = [0, 0], sizes = [1, 32], strides = [1, 1]} : vector<1x128xf32> to vector<1x32xf32>
    %160 = vector.extract_strided_slice %158 {offsets = [0, 32], sizes = [1, 32], strides = [1, 1]} : vector<1x128xf32> to vector<1x32xf32>
    %161 = vector.extract_strided_slice %158 {offsets = [0, 96], sizes = [1, 32], strides = [1, 1]} : vector<1x128xf32> to vector<1x32xf32>
    %162 = vector.extract_strided_slice %154 {offsets = [0, 64], sizes = [1, 32], strides = [1, 1]} : vector<1x128xf32> to vector<1x32xf32>
    %163 = arith.mulf %160, %127 : vector<1x32xf32>
    %164 = arith.mulf %159, %162 : vector<1x32xf32>
    %165 = arith.addf %163, %164 : vector<1x32xf32>
    %166 = math.tanh %165 : vector<1x32xf32>
    %167 = arith.mulf %161, %166 : vector<1x32xf32>
    %168 = vector.extract_strided_slice %15 {offsets = [4, 0], sizes = [1, 128], strides = [1, 1]} : vector<8x128xf32> to vector<1x128xf32>
    %169 = arith.truncf %147 : vector<1x32xf32> to vector<1x32xbf16>
    %cst_52 = arith.constant dense<0.000000e+00> : vector<1x128xf32>
    %170 = tpu.matmul %169, %1, %cst_52 {dimension_numbers = #tpu.dot_dimension_numbers<[1], [0], [0], [1], [0, 0, 1, 1], [], []>} : vector<1x32xbf16>, vector<32x128xbf16>, vector<1x128xf32> -> vector<1x128xf32>
    %171 = arith.addf %168, %170 : vector<1x128xf32>
    %172 = math.tanh %171 : vector<1x128xf32>
    %cst_53 = arith.constant 5.000000e-01 : f32
    %173 = vector.broadcast %cst_53 : f32 to vector<1x128xf32>
    %174 = arith.mulf %173, %172 : vector<1x128xf32>
    %cst_54 = arith.constant 5.000000e-01 : f32
    %175 = vector.broadcast %cst_54 : f32 to vector<1x128xf32>
    %176 = arith.addf %174, %175 : vector<1x128xf32>
    %177 = vector.extract_strided_slice %176 {offsets = [0, 0], sizes = [1, 32], strides = [1, 1]} : vector<1x128xf32> to vector<1x32xf32>
    %178 = vector.extract_strided_slice %176 {offsets = [0, 32], sizes = [1, 32], strides = [1, 1]} : vector<1x128xf32> to vector<1x32xf32>
    %179 = vector.extract_strided_slice %176 {offsets = [0, 96], sizes = [1, 32], strides = [1, 1]} : vector<1x128xf32> to vector<1x32xf32>
    %180 = vector.extract_strided_slice %172 {offsets = [0, 64], sizes = [1, 32], strides = [1, 1]} : vector<1x128xf32> to vector<1x32xf32>
    %181 = arith.mulf %178, %145 : vector<1x32xf32>
    %182 = arith.mulf %177, %180 : vector<1x32xf32>
    %183 = arith.addf %181, %182 : vector<1x32xf32>
    %184 = math.tanh %183 : vector<1x32xf32>
    %185 = arith.mulf %179, %184 : vector<1x32xf32>
    %186 = arith.truncf %167 : vector<1x32xf32> to vector<1x32xbf16>
    %cst_55 = arith.constant dense<0.000000e+00> : vector<1x128xf32>
    %187 = tpu.matmul %186, %4, %cst_55 {dimension_numbers = #tpu.dot_dimension_numbers<[1], [0], [0], [1], [0, 0, 1, 1], [], []>} : vector<1x32xbf16>, vector<32x128xbf16>, vector<1x128xf32> -> vector<1x128xf32>
    %188 = arith.truncf %185 : vector<1x32xf32> to vector<1x32xbf16>
    %cst_56 = arith.constant dense<0.000000e+00> : vector<1x128xf32>
    %189 = tpu.matmul %188, %3, %cst_56 {dimension_numbers = #tpu.dot_dimension_numbers<[1], [0], [0], [1], [0, 0, 1, 1], [], []>} : vector<1x32xbf16>, vector<32x128xbf16>, vector<1x128xf32> -> vector<1x128xf32>
    %190 = arith.addf %189, %187 : vector<1x128xf32>
    %191 = arith.addf %190, %5 : vector<1x128xf32>
    %192 = math.tanh %191 : vector<1x128xf32>
    %cst_57 = arith.constant 5.000000e-01 : f32
    %193 = vector.broadcast %cst_57 : f32 to vector<1x128xf32>
    %194 = arith.mulf %193, %192 : vector<1x128xf32>
    %cst_58 = arith.constant 5.000000e-01 : f32
    %195 = vector.broadcast %cst_58 : f32 to vector<1x128xf32>
    %196 = arith.addf %194, %195 : vector<1x128xf32>
    %197 = vector.extract_strided_slice %196 {offsets = [0, 0], sizes = [1, 32], strides = [1, 1]} : vector<1x128xf32> to vector<1x32xf32>
    %198 = vector.extract_strided_slice %196 {offsets = [0, 32], sizes = [1, 32], strides = [1, 1]} : vector<1x128xf32> to vector<1x32xf32>
    %199 = vector.extract_strided_slice %196 {offsets = [0, 96], sizes = [1, 32], strides = [1, 1]} : vector<1x128xf32> to vector<1x32xf32>
    %200 = vector.extract_strided_slice %192 {offsets = [0, 64], sizes = [1, 32], strides = [1, 1]} : vector<1x128xf32> to vector<1x32xf32>
    %201 = arith.mulf %198, %165 : vector<1x32xf32>
    %202 = arith.mulf %197, %200 : vector<1x32xf32>
    %203 = arith.addf %201, %202 : vector<1x32xf32>
    %204 = math.tanh %203 : vector<1x32xf32>
    %205 = arith.mulf %199, %204 : vector<1x32xf32>
    %206 = vector.extract_strided_slice %15 {offsets = [5, 0], sizes = [1, 128], strides = [1, 1]} : vector<8x128xf32> to vector<1x128xf32>
    %207 = arith.truncf %185 : vector<1x32xf32> to vector<1x32xbf16>
    %cst_59 = arith.constant dense<0.000000e+00> : vector<1x128xf32>
    %208 = tpu.matmul %207, %1, %cst_59 {dimension_numbers = #tpu.dot_dimension_numbers<[1], [0], [0], [1], [0, 0, 1, 1], [], []>} : vector<1x32xbf16>, vector<32x128xbf16>, vector<1x128xf32> -> vector<1x128xf32>
    %209 = arith.addf %206, %208 : vector<1x128xf32>
    %210 = math.tanh %209 : vector<1x128xf32>
    %cst_60 = arith.constant 5.000000e-01 : f32
    %211 = vector.broadcast %cst_60 : f32 to vector<1x128xf32>
    %212 = arith.mulf %211, %210 : vector<1x128xf32>
    %cst_61 = arith.constant 5.000000e-01 : f32
    %213 = vector.broadcast %cst_61 : f32 to vector<1x128xf32>
    %214 = arith.addf %212, %213 : vector<1x128xf32>
    %215 = vector.extract_strided_slice %214 {offsets = [0, 0], sizes = [1, 32], strides = [1, 1]} : vector<1x128xf32> to vector<1x32xf32>
    %216 = vector.extract_strided_slice %214 {offsets = [0, 32], sizes = [1, 32], strides = [1, 1]} : vector<1x128xf32> to vector<1x32xf32>
    %217 = vector.extract_strided_slice %214 {offsets = [0, 96], sizes = [1, 32], strides = [1, 1]} : vector<1x128xf32> to vector<1x32xf32>
    %218 = vector.extract_strided_slice %210 {offsets = [0, 64], sizes = [1, 32], strides = [1, 1]} : vector<1x128xf32> to vector<1x32xf32>
    %219 = arith.mulf %216, %183 : vector<1x32xf32>
    %220 = arith.mulf %215, %218 : vector<1x32xf32>
    %221 = arith.addf %219, %220 : vector<1x32xf32>
    %222 = math.tanh %221 : vector<1x32xf32>
    %223 = arith.mulf %217, %222 : vector<1x32xf32>
    %224 = arith.truncf %205 : vector<1x32xf32> to vector<1x32xbf16>
    %cst_62 = arith.constant dense<0.000000e+00> : vector<1x128xf32>
    %225 = tpu.matmul %224, %4, %cst_62 {dimension_numbers = #tpu.dot_dimension_numbers<[1], [0], [0], [1], [0, 0, 1, 1], [], []>} : vector<1x32xbf16>, vector<32x128xbf16>, vector<1x128xf32> -> vector<1x128xf32>
    %226 = arith.truncf %223 : vector<1x32xf32> to vector<1x32xbf16>
    %cst_63 = arith.constant dense<0.000000e+00> : vector<1x128xf32>
    %227 = tpu.matmul %226, %3, %cst_63 {dimension_numbers = #tpu.dot_dimension_numbers<[1], [0], [0], [1], [0, 0, 1, 1], [], []>} : vector<1x32xbf16>, vector<32x128xbf16>, vector<1x128xf32> -> vector<1x128xf32>
    %228 = arith.addf %227, %225 : vector<1x128xf32>
    %229 = arith.addf %228, %5 : vector<1x128xf32>
    %230 = math.tanh %229 : vector<1x128xf32>
    %cst_64 = arith.constant 5.000000e-01 : f32
    %231 = vector.broadcast %cst_64 : f32 to vector<1x128xf32>
    %232 = arith.mulf %231, %230 : vector<1x128xf32>
    %cst_65 = arith.constant 5.000000e-01 : f32
    %233 = vector.broadcast %cst_65 : f32 to vector<1x128xf32>
    %234 = arith.addf %232, %233 : vector<1x128xf32>
    %235 = vector.extract_strided_slice %234 {offsets = [0, 0], sizes = [1, 32], strides = [1, 1]} : vector<1x128xf32> to vector<1x32xf32>
    %236 = vector.extract_strided_slice %234 {offsets = [0, 32], sizes = [1, 32], strides = [1, 1]} : vector<1x128xf32> to vector<1x32xf32>
    %237 = vector.extract_strided_slice %234 {offsets = [0, 96], sizes = [1, 32], strides = [1, 1]} : vector<1x128xf32> to vector<1x32xf32>
    %238 = vector.extract_strided_slice %230 {offsets = [0, 64], sizes = [1, 32], strides = [1, 1]} : vector<1x128xf32> to vector<1x32xf32>
    %239 = arith.mulf %236, %203 : vector<1x32xf32>
    %240 = arith.mulf %235, %238 : vector<1x32xf32>
    %241 = arith.addf %239, %240 : vector<1x32xf32>
    %242 = math.tanh %241 : vector<1x32xf32>
    %243 = arith.mulf %237, %242 : vector<1x32xf32>
    %244 = vector.extract_strided_slice %15 {offsets = [6, 0], sizes = [1, 128], strides = [1, 1]} : vector<8x128xf32> to vector<1x128xf32>
    %245 = arith.truncf %223 : vector<1x32xf32> to vector<1x32xbf16>
    %cst_66 = arith.constant dense<0.000000e+00> : vector<1x128xf32>
    %246 = tpu.matmul %245, %1, %cst_66 {dimension_numbers = #tpu.dot_dimension_numbers<[1], [0], [0], [1], [0, 0, 1, 1], [], []>} : vector<1x32xbf16>, vector<32x128xbf16>, vector<1x128xf32> -> vector<1x128xf32>
    %247 = arith.addf %244, %246 : vector<1x128xf32>
    %248 = math.tanh %247 : vector<1x128xf32>
    %cst_67 = arith.constant 5.000000e-01 : f32
    %249 = vector.broadcast %cst_67 : f32 to vector<1x128xf32>
    %250 = arith.mulf %249, %248 : vector<1x128xf32>
    %cst_68 = arith.constant 5.000000e-01 : f32
    %251 = vector.broadcast %cst_68 : f32 to vector<1x128xf32>
    %252 = arith.addf %250, %251 : vector<1x128xf32>
    %253 = vector.extract_strided_slice %252 {offsets = [0, 0], sizes = [1, 32], strides = [1, 1]} : vector<1x128xf32> to vector<1x32xf32>
    %254 = vector.extract_strided_slice %252 {offsets = [0, 32], sizes = [1, 32], strides = [1, 1]} : vector<1x128xf32> to vector<1x32xf32>
    %255 = vector.extract_strided_slice %252 {offsets = [0, 96], sizes = [1, 32], strides = [1, 1]} : vector<1x128xf32> to vector<1x32xf32>
    %256 = vector.extract_strided_slice %248 {offsets = [0, 64], sizes = [1, 32], strides = [1, 1]} : vector<1x128xf32> to vector<1x32xf32>
    %257 = arith.mulf %254, %221 : vector<1x32xf32>
    %258 = arith.mulf %253, %256 : vector<1x32xf32>
    %259 = arith.addf %257, %258 : vector<1x32xf32>
    %260 = math.tanh %259 : vector<1x32xf32>
    %261 = arith.mulf %255, %260 : vector<1x32xf32>
    %262 = arith.truncf %243 : vector<1x32xf32> to vector<1x32xbf16>
    %cst_69 = arith.constant dense<0.000000e+00> : vector<1x128xf32>
    %263 = tpu.matmul %262, %4, %cst_69 {dimension_numbers = #tpu.dot_dimension_numbers<[1], [0], [0], [1], [0, 0, 1, 1], [], []>} : vector<1x32xbf16>, vector<32x128xbf16>, vector<1x128xf32> -> vector<1x128xf32>
    %264 = arith.truncf %261 : vector<1x32xf32> to vector<1x32xbf16>
    %cst_70 = arith.constant dense<0.000000e+00> : vector<1x128xf32>
    %265 = tpu.matmul %264, %3, %cst_70 {dimension_numbers = #tpu.dot_dimension_numbers<[1], [0], [0], [1], [0, 0, 1, 1], [], []>} : vector<1x32xbf16>, vector<32x128xbf16>, vector<1x128xf32> -> vector<1x128xf32>
    %266 = arith.addf %265, %263 : vector<1x128xf32>
    %267 = arith.addf %266, %5 : vector<1x128xf32>
    %268 = math.tanh %267 : vector<1x128xf32>
    %cst_71 = arith.constant 5.000000e-01 : f32
    %269 = vector.broadcast %cst_71 : f32 to vector<1x128xf32>
    %270 = arith.mulf %269, %268 : vector<1x128xf32>
    %cst_72 = arith.constant 5.000000e-01 : f32
    %271 = vector.broadcast %cst_72 : f32 to vector<1x128xf32>
    %272 = arith.addf %270, %271 : vector<1x128xf32>
    %273 = vector.extract_strided_slice %272 {offsets = [0, 0], sizes = [1, 32], strides = [1, 1]} : vector<1x128xf32> to vector<1x32xf32>
    %274 = vector.extract_strided_slice %272 {offsets = [0, 32], sizes = [1, 32], strides = [1, 1]} : vector<1x128xf32> to vector<1x32xf32>
    %275 = vector.extract_strided_slice %272 {offsets = [0, 96], sizes = [1, 32], strides = [1, 1]} : vector<1x128xf32> to vector<1x32xf32>
    %276 = vector.extract_strided_slice %268 {offsets = [0, 64], sizes = [1, 32], strides = [1, 1]} : vector<1x128xf32> to vector<1x32xf32>
    %277 = arith.mulf %274, %241 : vector<1x32xf32>
    %278 = arith.mulf %273, %276 : vector<1x32xf32>
    %279 = arith.addf %277, %278 : vector<1x32xf32>
    %280 = math.tanh %279 : vector<1x32xf32>
    %281 = arith.mulf %275, %280 : vector<1x32xf32>
    %282 = vector.extract_strided_slice %15 {offsets = [7, 0], sizes = [1, 128], strides = [1, 1]} : vector<8x128xf32> to vector<1x128xf32>
    %283 = arith.truncf %261 : vector<1x32xf32> to vector<1x32xbf16>
    %cst_73 = arith.constant dense<0.000000e+00> : vector<1x128xf32>
    %284 = tpu.matmul %283, %1, %cst_73 {dimension_numbers = #tpu.dot_dimension_numbers<[1], [0], [0], [1], [0, 0, 1, 1], [], []>} : vector<1x32xbf16>, vector<32x128xbf16>, vector<1x128xf32> -> vector<1x128xf32>
    %285 = arith.addf %282, %284 : vector<1x128xf32>
    %286 = math.tanh %285 : vector<1x128xf32>
    %cst_74 = arith.constant 5.000000e-01 : f32
    %287 = vector.broadcast %cst_74 : f32 to vector<1x128xf32>
    %288 = arith.mulf %287, %286 : vector<1x128xf32>
    %cst_75 = arith.constant 5.000000e-01 : f32
    %289 = vector.broadcast %cst_75 : f32 to vector<1x128xf32>
    %290 = arith.addf %288, %289 : vector<1x128xf32>
    %291 = vector.extract_strided_slice %290 {offsets = [0, 0], sizes = [1, 32], strides = [1, 1]} : vector<1x128xf32> to vector<1x32xf32>
    %292 = vector.extract_strided_slice %290 {offsets = [0, 32], sizes = [1, 32], strides = [1, 1]} : vector<1x128xf32> to vector<1x32xf32>
    %293 = vector.extract_strided_slice %290 {offsets = [0, 96], sizes = [1, 32], strides = [1, 1]} : vector<1x128xf32> to vector<1x32xf32>
    %294 = vector.extract_strided_slice %286 {offsets = [0, 64], sizes = [1, 32], strides = [1, 1]} : vector<1x128xf32> to vector<1x32xf32>
    %295 = arith.mulf %292, %259 : vector<1x32xf32>
    %296 = arith.mulf %291, %294 : vector<1x32xf32>
    %297 = arith.addf %295, %296 : vector<1x32xf32>
    %298 = math.tanh %297 : vector<1x32xf32>
    %299 = arith.mulf %293, %298 : vector<1x32xf32>
    %300 = arith.truncf %281 : vector<1x32xf32> to vector<1x32xbf16>
    %cst_76 = arith.constant dense<0.000000e+00> : vector<1x128xf32>
    %301 = tpu.matmul %300, %4, %cst_76 {dimension_numbers = #tpu.dot_dimension_numbers<[1], [0], [0], [1], [0, 0, 1, 1], [], []>} : vector<1x32xbf16>, vector<32x128xbf16>, vector<1x128xf32> -> vector<1x128xf32>
    %302 = arith.truncf %299 : vector<1x32xf32> to vector<1x32xbf16>
    %cst_77 = arith.constant dense<0.000000e+00> : vector<1x128xf32>
    %303 = tpu.matmul %302, %3, %cst_77 {dimension_numbers = #tpu.dot_dimension_numbers<[1], [0], [0], [1], [0, 0, 1, 1], [], []>} : vector<1x32xbf16>, vector<32x128xbf16>, vector<1x128xf32> -> vector<1x128xf32>
    %304 = arith.addf %303, %301 : vector<1x128xf32>
    %305 = arith.addf %304, %5 : vector<1x128xf32>
    %306 = math.tanh %305 : vector<1x128xf32>
    %cst_78 = arith.constant 5.000000e-01 : f32
    %307 = vector.broadcast %cst_78 : f32 to vector<1x128xf32>
    %308 = arith.mulf %307, %306 : vector<1x128xf32>
    %cst_79 = arith.constant 5.000000e-01 : f32
    %309 = vector.broadcast %cst_79 : f32 to vector<1x128xf32>
    %310 = arith.addf %308, %309 : vector<1x128xf32>
    %311 = vector.extract_strided_slice %310 {offsets = [0, 0], sizes = [1, 32], strides = [1, 1]} : vector<1x128xf32> to vector<1x32xf32>
    %312 = vector.extract_strided_slice %310 {offsets = [0, 32], sizes = [1, 32], strides = [1, 1]} : vector<1x128xf32> to vector<1x32xf32>
    %313 = vector.extract_strided_slice %310 {offsets = [0, 96], sizes = [1, 32], strides = [1, 1]} : vector<1x128xf32> to vector<1x32xf32>
    %314 = vector.extract_strided_slice %306 {offsets = [0, 64], sizes = [1, 32], strides = [1, 1]} : vector<1x128xf32> to vector<1x32xf32>
    %315 = arith.mulf %312, %279 : vector<1x32xf32>
    %316 = arith.mulf %311, %314 : vector<1x32xf32>
    %317 = arith.addf %315, %316 : vector<1x32xf32>
    %318 = math.tanh %317 : vector<1x32xf32>
    %319 = arith.mulf %313, %318 : vector<1x32xf32>
    %320 = tpu.concatenate %53, %91, %129, %167, %205, %243, %281, %319 in 0 : vector<1x32xf32>, vector<1x32xf32>, vector<1x32xf32>, vector<1x32xf32>, vector<1x32xf32>, vector<1x32xf32>, vector<1x32xf32>, vector<1x32xf32> -> vector<8x32xf32>
    %cst_80 = arith.constant dense<0.000000e+00> : vector<8x128xf32>
    %321 = tpu.matmul %320, %6, %cst_80 {dimension_numbers = #tpu.dot_dimension_numbers<[1], [0], [0], [1], [0, 0, 1, 1], [], []>} : vector<8x32xf32>, vector<32x128xf32>, vector<8x128xf32> -> vector<8x128xf32>
    %322 = vector.broadcast %7 : vector<1x128xf32> to vector<8x128xf32>
    %323 = arith.addf %321, %322 : vector<8x128xf32>
    %c0_81 = arith.constant 0 : index
    %c0_82 = arith.constant 0 : index
    %324 = vector.load %arg11[%c0_81, %c0_82] : memref<8x128xf32, #tpu.memory_space<vmem>>, vector<8x128xf32>
    tpu.vector_store %arg11[%c0_81, %c0_82], %323 {strides = array<i32>} : memref<8x128xf32, #tpu.memory_space<vmem>>, vector<8x128xf32>,
    %325 = tpu.concatenate %299, %319 in 0 : vector<1x32xf32>, vector<1x32xf32> -> vector<2x32xf32>
    %c0_83 = arith.constant 0 : index
    %c0_84 = arith.constant 0 : index
    %326 = vector.load %arg12[%c0_83, %c0_84] : memref<2x32xf32, #tpu.memory_space<vmem>>, vector<2x32xf32>
    tpu.vector_store %arg12[%c0_83, %c0_84], %325 {strides = array<i32>} : memref<2x32xf32, #tpu.memory_space<vmem>>, vector<2x32xf32>,
    %327 = tpu.concatenate %297, %317 in 0 : vector<1x32xf32>, vector<1x32xf32> -> vector<2x32xf32>
    %c0_85 = arith.constant 0 : index
    %c0_86 = arith.constant 0 : index
    %328 = vector.load %arg13[%c0_85, %c0_86] : memref<2x32xf32, #tpu.memory_space<vmem>>, vector<2x32xf32>
    tpu.vector_store %arg13[%c0_85, %c0_86], %327 {strides = array<i32>} : memref<2x32xf32, #tpu.memory_space<vmem>>, vector<2x32xf32>,
    return
  }
}

</mosaic_0001>

<bundles_post_ra>
// kernel: lstm_decoder_forward.1
= control target key start
LH: loop header
LB: loop body
LE: loop exit
PB: predicated region body
PF: predicated region fallthrough
CT: control target
= control target key end

     0   :  { %19 = vsyncpa [#allocation3], 0  ;;  %v2327_v0 = vmov 0.0   ;;  %v2328_v1 = vmov 0.0|0.0   ;;  %vm2329_vm0 = vmmov 0   ;;  %vm76_vm1 = vcmask 130048   ;;  %s2860_s0 = inlined_call_operand.vmem [shape: f32[8,16], index: 0, kind: input, shape index: {}]   ;;  %s2861_s1 = inlined_call_operand.vmem [shape: f32[2,32], index: 1, kind: input, shape index: {}]   ;;  %s2862_s2 = inlined_call_operand.vmem [shape: f32[2,32], index: 2, kind: input, shape index: {}]   ;;  %s2863_s3 = inlined_call_operand.vmem [shape: f32[16,128], index: 3, kind: input, shape index: {}]   ;;  %s2864_s4 = inlined_call_operand.vmem [shape: bf16[32,128], index: 4, kind: input, shape index: {}]   ;;  %s2865_s5 = inlined_call_operand.vmem [shape: f32[1,128], index: 5, kind: input, shape index: {}]   ;;  %s2866_s6 = inlined_call_operand.vmem [shape: bf16[32,128], index: 6, kind: input, shape index: {}]   ;;  %s2867_s7 = inlined_call_operand.vmem [shape: bf16[32,128], index: 7, kind: input, shape index: {}]   ;;  %s2868_s8 = inlined_call_operand.vmem [shape: f32[1,128], index: 8, kind: input, shape index: {}]   ;;  %s2869_s9 = inlined_call_operand.vmem [shape: f32[32,128], index: 9, kind: input, shape index: {}]   ;;  %s2870_s10 = inlined_call_operand.vmem [shape: f32[1,128], index: 10, kind: input, shape index: {}]   ;;  %s2871_s11 = inlined_call_operand.hbm [shape: f32[8,128], index: 11, kind: output, shape index: {0}]   ;;  %s2872_s12 = inlined_call_operand.hbm [shape: f32[2,32], index: 12, kind: output, shape index: {1}]   ;;  %s2873_s13 = inlined_call_operand.hbm [shape: f32[2,32], index: 13, kind: output, shape index: {2}]  }
   0x1   :  { %1963 = vmatprep.subr.bf16.mxu1 %v2327_v0  ;;  %2166 = vmatprep.subr.bf16.mxu0 %v2328_v1  ;;  %v2411_v2 = vld [vmem:[%s2864_s4] sm:$0xff]   ;;  %v45_v4 = vld [vmem:[%s2863_s3 + $0x8] sm:$0xff] }
   0x2   :  { %v44_v3 = vld [vmem:[%s2863_s3] sm:$0xff]  ;;  %1960 = vmatprep.mubr.msk.f32.mxu0 %vm2329_vm0, %v2327_v0  ;;  %1967 = vmatprep.mubr.msk.bf16.mxu1 %vm2329_vm0, %v2327_v0  ;;  %v2430_v7 = vld [vmem:[%s2864_s4 + $0x8] sm:$0xff]  }
   0x3   :  { %v2167_v5 = vpack.c.bf16 %v45_v4, %v44_v3  ;;  %1964 = vmatpush3.bf16.msra.mxu1 %v2411_v2  ;;  %v69_v6 = vld [vmem:[%s2860_s0] sm:$0xff] }
   0x4   :  { %v65_v8 = vld [vmem:[%s2861_s1] sm:$0x1]  ;;  %1965 = vmatprep.subr.bf16.mxu1 %v2327_v0 }
   0x5   :  { %2168 = vmatpush3.bf16.msra.mxu0 %v2167_v5  ;;  %v150_v9 = vpack.c.bf16 %v65_v8, %v65_v8 }
   0x6   :  { %1971 = vmatprep.subr.bf16.mxu0 %v2327_v0 }
   0x7   :  { %20 = vsyncpa [#allocation5], 0  ;;  %1966 = vmatpush3.bf16.msra.mxu1 %v2430_v7  ;;  %vm163_vm2 = vcmask 261120   ;;  %v1842_v10 = vld [vmem:[%s2865_s5] ss:$0 sm:$0xff]  ;;  %s2330_s20 = smov 64  }
   0x8   :  { %1961 = vmatmul.mubr.msk.f32.vlgmr.msra.gmra.mrb[0].mxu0 %vm76_vm1, %v69_v6  ;;  %1979 = vmatprep.subr.bf16.mxu1 %v2327_v0  ;;  %v67_v20 = vld [vmem:[%s2862_s2] sm:$0x1]  ;;  %s2331_s5 = smov 32   ;;  %v2473_v31 = vld [vmem:[%s2867_s7 + $0x8] sm:$0xff]   ;;  %v66_v32 = vld [vmem:[%s2861_s1 + $0x1] sm:$0x1] }
   0x9   :  { %1975 = vmatprep.mubr.msk.bf16.mxu0 %vm2329_vm0, %v2327_v0  ;;  %v2462_v29 = vld [vmem:[%s2867_s7] sm:$0xff]   ;;  %v2483_v33 = vld [vmem:[%s2866_s6 + $0x8] sm:$0xff]   ;;  %v232_v34 = vpack.c.bf16 %v66_v32, %v66_v32  ;;  %vm1681_vm3 = vcmask 1040384   ;;  %vm1683_vm4 = vcmask 1041408   ;;  %vm1685_vm5 = vcmask 1042432  }
   0xa   :  { %1968 = vmatmul.mubr.msk.bf16.vlgmr.msra.gmra.mrb[0].mxu1 %vm163_vm2, %v150_v9  ;;  %v2467_v30 = vld [vmem:[%s2866_s6] sm:$0xff]   ;;  %1972 = vmatpush3.bf16.msra.mxu0 %v2462_v29  ;;  %vm1687_vm6 = vcmask 1043456   ;;  %vm1689_vm7 = vcmask 1044480   ;;  %vm1691_vm8 = vcmask 1045504   ;;  %vm1693_vm9 = vcmask 1046528  }
   0xb   :  { %1983 = vmatprep.mubr.msk.bf16.mxu1 %vm2329_vm0, %v2327_v0  ;;  %1973 = vmatprep.subr.bf16.mxu0 %v2327_v0  ;;  %v2516_v44 = vld [vmem:[%s2868_s8] sm:$0x1]  ;;  %v68_v59 = vld [vmem:[%s2862_s2 + $0x1] sm:$0x1]  ;;  %vm1787_vm10 = vcmask 254976  }
   0xc   :  { %1980 = vmatpush3.bf16.msra.mxu1 %v2467_v30 }
   0xd   :  { %1981 = vmatprep.subr.bf16.mxu1 %v2327_v0 }
   0xe   :  { %1974 = vmatpush3.bf16.msra.mxu0 %v2473_v31 }
   0xf   :  { %1987 = vmatprep.subr.bf16.mxu0 %v2327_v0 }
  0x10   :  { %1982 = vmatpush3.bf16.msra.mxu1 %v2483_v33 }
  0x11   :  { %1995 = vmatprep.subr.bf16.mxu1 %v2327_v0  ;;  %1976 = vmatmul.mubr.msk.bf16.vlgmr.msra.gmra.mrb[4].mxu0 %vm163_vm2, %v232_v34 }
  0x12   :  { %1988 = vmatpush3.bf16.msra.mxu0 %v2411_v2  ;;  %1991 = vmatprep.mubr.msk.bf16.mxu0 %vm2329_vm0, %v2327_v0 }
  0x13   :  { %1989 = vmatprep.subr.bf16.mxu0 %v2327_v0 }
  0x16   :  { %1990 = vmatpush3.bf16.msra.mxu0 %v2430_v7 }
  0x17   :  { %2003 = vmatprep.subr.bf16.mxu0 %v2327_v0 }
  0xdb   :  { %v146_v11 = vpop.f32.mrb[0].mxu0 }
  0xdc   :  { %v2447_v12 = vadd.f32 %v1842_v10, %v146_v11  ;;  %v1962_v13 = vpop.f32.mrb[1].mxu0 }
  0xdd   :  { %v201_v14 = vpop.f32.mrb[0].mxu1 }
  0xde   :  { %v207_v15 = vadd.f32 %v201_v14, %v2447_v12  ;;  %v1969_v16 = vpop.f32.mrb[1].mxu1 }
  0xdf   :  { %v204_v17 = vpop.f32.mrb[2].mxu1 }
  0xe0   :  { %2190 = vtanh.f32 %v207_v15  ;;  %v1970_v18 = vpop.f32.mrb[3].mxu1 }
  0xe4   :  { %v282_v39 = vpop.f32.mrb[4].mxu0 }
  0xe5   :  { %v1977_v40 = vpop.f32.mrb[5].mxu0 }
  0xe6   :  { %v285_v41 = vpop.f32.mrb[6].mxu0 }
  0xe7   :  { %v1978_v42 = vpop.f32.mrb[7].mxu0 }
  0xea   :  { %v2191_v19 = vpop.eup %2190 }
  0xeb   :  { %217 = vrot.lane.b32.xlu0 %v2191_v19, %s2330_s20  ;;  %v209_v21 = vmul.f32 0.5, %v2191_v19 }
  0xed   :  { %v210_v22 = vadd.f32 0.5, %v209_v21 }
  0xef   :  { %212 = vrot.lane.b32.xlu0 %v67_v20, %s2331_s5 }
 0x15d   :  { %v218_v23 = vpop.permute.xlu0 %217 }
 0x15e   :  { %v220_v24 = vmul.f32 %v218_v23, %v210_v22 }
 0x160   :  { %222 = vrot.lane.b32.xlu1 %v220_v24, %s2331_s5 }
 0x161   :  { %v213_v25 = vpop.permute.xlu0 %212 }
 0x162   :  { %v215_v26 = vmul.f32 %v213_v25, %v210_v22 }
 0x1d2   :  { %v223_v27 = vpop.permute.xlu1 %222 }
 0x1d3   :  { %v2456_v28 = vadd.f32 %v223_v27, %v215_v26 }
 0x1d5   :  { %2192 = vtanh.f32 %v2456_v28  ;;  %v420_v9 = vrot.slane %v2456_v28, 7 }
 0x1df   :  { %v2193_v35 = vpop.eup %2192 }
 0x1e0   :  { %228 = vrot.lane.b32.xlu1 %v2193_v35, %s2330_s20 }
 0x252   :  { %v229_v36 = vpop.permute.xlu1 %228 }
 0x253   :  { %v231_v37 = vmul.f32 %v229_v36, %v210_v22 }
 0x255   :  { %v288_v38 = vpack.c.bf16 %v231_v37, %v231_v37 }
 0x257   :  { %290 = vrot.lane.b32.xlu0 %v288_v38, %s2331_s5 }
 0x2c9   :  { %v291_v43 = vpop.permute.xlu0 %290 }
 0x2ca   :  { %1984 = vmatmul.mubr.msk.bf16.vlgmr.msra.gmra.mrb[4].mxu1 %vm163_vm2, %v291_v43  ;;  %1992 = vmatmul.mubr.msk.bf16.vlgmr.msra.gmra.mrb[8].mxu0 %vm163_vm2, %v291_v43 }
 0x2cb   :  { %1996 = vmatpush3.bf16.msra.mxu1 %v2462_v29  ;;  %2004 = vmatpush3.bf16.msra.mxu0 %v2467_v30 }
 0x2cc   :  { %1997 = vmatprep.subr.bf16.mxu1 %v2327_v0  ;;  %2005 = vmatprep.subr.bf16.mxu0 %v2327_v0 }
 0x2cd   :  { %1999 = vmatprep.mubr.msk.bf16.mxu1 %vm2329_vm0, %v2327_v0  ;;  %2007 = vmatprep.mubr.msk.bf16.mxu0 %vm2329_vm0, %v2327_v0 }
 0x2cf   :  { %1998 = vmatpush3.bf16.msra.mxu1 %v2473_v31  ;;  %2006 = vmatpush3.bf16.msra.mxu0 %v2483_v33 }
 0x2d0   :  { %2011 = vmatprep.subr.bf16.mxu1 %v2327_v0  ;;  %2019 = vmatprep.subr.bf16.mxu0 %v2327_v0 }
 0x39d   :  { %v341_v45 = vpop.f32.mrb[4].mxu1  ;;  %v406_v46 = vpop.f32.mrb[8].mxu0 }
 0x39e   :  { %v342_v47 = vadd.f32 %v341_v45, %v282_v39  ;;  %v413_v48 = vrot.slane %v406_v46, 7  ;;  %v1985_v49 = vpop.f32.mrb[5].mxu1  ;;  %v1993_v50 = vpop.f32.mrb[9].mxu0 }
 0x39f   :  { %v344_v51 = vpop.f32.mrb[6].mxu1  ;;  %v409_v52 = vpop.f32.mrb[10].mxu0 }
 0x3a0   :  { %v347_v53 = vadd.f32 %v342_v47, %v2516_v44  ;;  %v415_v54 = vadd.f32 %v413_v48, %v2447_v12  ;;  %v1986_v55 = vpop.f32.mrb[7].mxu1  ;;  %v1994_v56 = vpop.f32.mrb[11].mxu0 }
 0x3a2   :  { %2194 = vtanh.f32 %v347_v53 }
 0x3a3   :  { %2196 = vtanh.f32 %v415_v54 }
 0x3ac   :  { %v2195_v57 = vpop.eup %2194 }
 0x3ad   :  { %v2197_v58 = vpop.eup %2196  ;;  %357 = vrot.lane.b32.xlu1 %v2195_v57, %s2330_s20  ;;  %v349_v60 = vmul.f32 0.5, %v2195_v57 }
 0x3ae   :  { %424 = vrot.lane.b32.xlu0 %v2197_v58, %s2330_s20  ;;  %v417_v61 = vmul.f32 0.5, %v2197_v58 }
 0x3af   :  { %v350_v62 = vadd.f32 0.5, %v349_v60 }
 0x3b0   :  { %v418_v3 = vadd.f32 0.5, %v417_v61 }
 0x3b1   :  { %352 = vrot.lane.b32.xlu1 %v68_v59, %s2331_s5 }
 0x3b2   :  { %v422_v13 = vmul.f32 %v420_v9, %v418_v3 }
 0x41f   :  { %v358_v63 = vpop.permute.xlu1 %357 }
 0x420   :  { %v360_v4 = vmul.f32 %v358_v63, %v350_v62  ;;  %v425_v5 = vpop.permute.xlu0 %424 }
 0x421   :  { %v427_v6 = vmul.f32 %v425_v5, %v418_v3 }
 0x422   :  { %362 = vrot.lane.b32.xlu0 %v360_v4, %s2331_s5 }
 0x423   :  { %429 = vrot.lane.b32.xlu1 %v427_v6, %s2331_s5  ;;  %v353_v8 = vpop.permute.xlu1 %352 }
 0x424   :  { %v355_v10 = vmul.f32 %v353_v8, %v350_v62 }
 0x494   :  { %v363_v11 = vpop.permute.xlu0 %362 }
 0x495   :  { %v2529_v14 = vadd.f32 %v363_v11, %v355_v10  ;;  %v430_v15 = vpop.permute.xlu1 %429 }
 0x496   :  { %v2531_v16 = vadd.f32 %v430_v15, %v422_v13 }
 0x497   :  { %2198 = vtanh.f32 %v2529_v14 }
 0x498   :  { %2200 = vtanh.f32 %v2531_v16 }
 0x4a1   :  { %v2199_v17 = vpop.eup %2198 }
 0x4a2   :  { %v2201_v18 = vpop.eup %2200  ;;  %368 = vrot.lane.b32.xlu0 %v2199_v17, %s2330_s20 }
 0x4a3   :  { %435 = vrot.lane.b32.xlu1 %v2201_v18, %s2330_s20 }
 0x514   :  { %v369_v19 = vpop.permute.xlu0 %368 }
 0x515   :  { %v2537_v20 = vmul.f32 %v369_v19, %v350_v62  ;;  %v436_v21 = vpop.permute.xlu1 %435  ;;  %v604_v62 = vrot.slane %v2531_v16, 7 }
 0x516   :  { %v438_v22 = vmul.f32 %v436_v21, %v418_v3 }
 0x517   :  { %v439_v23 = vpack.c.bf16 %v2537_v20, %v2537_v20 }
 0x518   :  { %v486_v24 = vpack.c.bf16 %v438_v22, %v438_v22 }
 0x519   :  { %441 = vrot.lane.b32.xlu0 %v439_v23, %s2331_s5 }
 0x51a   :  { %v488_v25 = vshrl.u32 %v486_v24, 16 }
 0x51c   :  { %490 = vrot.lane.b32.xlu1 %v488_v25, %s2331_s5 }
 0x58b   :  { %v442_v26 = vpop.permute.xlu0 %441 }
 0x58c   :  { %2000 = vmatmul.mubr.msk.bf16.vlgmr.msra.gmra.mrb[8].mxu1 %vm163_vm2, %v442_v26 }
 0x58d   :  { %2012 = vmatpush3.bf16.msra.mxu1 %v2411_v2  ;;  %2015 = vmatprep.mubr.msk.bf16.mxu1 %vm2329_vm0, %v2327_v0 }
 0x58e   :  { %v491_v27 = vpop.permute.xlu1 %490  ;;  %2013 = vmatprep.subr.bf16.mxu1 %v2327_v0 }
 0x58f   :  { %2008 = vmatmul.mubr.msk.bf16.vlgmr.msra.gmra.mrb[12].mxu0 %vm163_vm2, %v491_v27 }
 0x590   :  { %2020 = vmatpush3.bf16.msra.mxu0 %v2462_v29  ;;  %2023 = vmatprep.mubr.msk.bf16.mxu0 %vm2329_vm0, %v2327_v0 }
 0x591   :  { %2014 = vmatpush3.bf16.msra.mxu1 %v2430_v7  ;;  %2021 = vmatprep.subr.bf16.mxu0 %v2327_v0 }
 0x592   :  { %2027 = vmatprep.subr.bf16.mxu1 %v2327_v0 }
 0x594   :  { %2016 = vmatmul.mubr.msk.bf16.vlgmr.msra.gmra.mrb[12].mxu1 %vm163_vm2, %v491_v27  ;;  %2022 = vmatpush3.bf16.msra.mxu0 %v2473_v31 }
 0x595   :  { %2035 = vmatprep.subr.bf16.mxu0 %v2327_v0  ;;  %2028 = vmatpush3.bf16.msra.mxu1 %v2467_v30 }
 0x596   :  { %2029 = vmatprep.subr.bf16.mxu1 %v2327_v0  ;;  %2031 = vmatprep.mubr.msk.bf16.mxu1 %vm2329_vm0, %v2327_v0 }
 0x599   :  { %2030 = vmatpush3.bf16.msra.mxu1 %v2483_v33 }
 0x59a   :  { %2043 = vmatprep.subr.bf16.mxu1 %v2327_v0 }
 0x65f   :  { %v480_v28 = vpop.f32.mrb[8].mxu1 }
 0x660   :  { %v2001_v32 = vpop.f32.mrb[9].mxu1 }
 0x661   :  { %v483_v34 = vpop.f32.mrb[10].mxu1 }
 0x662   :  { %v529_v35 = vpop.f32.mrb[12].mxu0  ;;  %v2002_v36 = vpop.f32.mrb[11].mxu1 }
 0x663   :  { %v530_v37 = vadd.f32 %v529_v35, %v480_v28  ;;  %v2009_v38 = vpop.f32.mrb[13].mxu0 }
 0x664   :  { %v532_v39 = vpop.f32.mrb[14].mxu0 }
 0x665   :  { %v535_v40 = vadd.f32 %v530_v37, %v2516_v44  ;;  %v2010_v41 = vpop.f32.mrb[15].mxu0 }
 0x667   :  { %2202 = vtanh.f32 %v535_v40  ;;  %v590_v42 = vpop.f32.mrb[12].mxu1 }
 0x668   :  { %v597_v43 = vrot.slane %v590_v42, 6  ;;  %v2017_v45 = vpop.f32.mrb[13].mxu1 }
 0x669   :  { %v593_v46 = vpop.f32.mrb[14].mxu1 }
 0x66a   :  { %v599_v47 = vadd.f32 %v597_v43, %v2447_v12  ;;  %v2018_v48 = vpop.f32.mrb[15].mxu1 }
 0x66c   :  { %2204 = vtanh.f32 %v599_v47 }
 0x671   :  { %v2203_v49 = vpop.eup %2202 }
 0x672   :  { %541 = vrot.lane.b32.xlu0 %v2203_v49, %s2330_s20  ;;  %v537_v51 = vmul.f32 0.5, %v2203_v49 }
 0x674   :  { %v538_v52 = vadd.f32 0.5, %v537_v51 }
 0x676   :  { %v2205_v50 = vpop.eup %2204  ;;  %v539_v59 = vmul.f32 %v538_v52, %v2529_v14 }
 0x677   :  { %608 = vrot.lane.b32.xlu1 %v2205_v50, %s2330_s20  ;;  %v601_v54 = vmul.f32 0.5, %v2205_v50 }
 0x679   :  { %v602_v56 = vadd.f32 0.5, %v601_v54 }
 0x67b   :  { %v606_v63 = vmul.f32 %v604_v62, %v602_v56 }
 0x6e4   :  { %v542_v53 = vpop.permute.xlu0 %541 }
 0x6e5   :  { %v544_v55 = vmul.f32 %v542_v53, %v538_v52 }
 0x6e7   :  { %546 = vrot.lane.b32.xlu0 %v544_v55, %s2331_s5 }
 0x6e9   :  { %v609_v57 = vpop.permute.xlu1 %608 }
 0x6ea   :  { %v611_v58 = vmul.f32 %v609_v57, %v602_v56 }
 0x6ec   :  { %613 = vrot.lane.b32.xlu1 %v611_v58, %s2331_s5 }
 0x759   :  { %v547_v60 = vpop.permute.xlu0 %546 }
 0x75a   :  { %v2571_v61 = vadd.f32 %v547_v60, %v539_v59 }
 0x75c   :  { %2206 = vtanh.f32 %v2571_v61 }
 0x75e   :  { %v614_v3 = vpop.permute.xlu1 %613 }
 0x75f   :  { %v2575_v4 = vadd.f32 %v614_v3, %v606_v63 }
 0x761   :  { %2208 = vtanh.f32 %v2575_v4  ;;  %v787_v50 = vrot.slane %v2575_v4, 7 }
 0x766   :  { %v2207_v5 = vpop.eup %2206 }
 0x767   :  { %552 = vrot.lane.b32.xlu0 %v2207_v5, %s2330_s20 }
 0x76b   :  { %v2209_v6 = vpop.eup %2208 }
 0x76c   :  { %619 = vrot.lane.b32.xlu1 %v2209_v6, %s2330_s20 }
 0x7d9   :  { %v553_v8 = vpop.permute.xlu0 %552 }
 0x7da   :  { %v2580_v9 = vmul.f32 %v553_v8, %v538_v52 }
 0x7dc   :  { %v623_v10 = vpack.c.bf16 %v2580_v9, %v2580_v9  ;;  %v1661_v59 = vrot.slane %v2580_v9, 7 }
 0x7de   :  { %625 = vrot.lane.b32.xlu0 %v623_v10, %s2331_s5  ;;  %v620_v11 = vpop.permute.xlu1 %619  ;;  %v1682_v6 = vsel %vm1681_vm3, %v2537_v20, %v1661_v59 }
 0x7df   :  { %v622_v13 = vmul.f32 %v620_v11, %v602_v56 }
 0x7e1   :  { %v670_v14 = vpack.c.bf16 %v622_v13, %v622_v13 }
 0x7e3   :  { %v672_v15 = vrot.slane %v670_v14, 1 }
 0x7e5   :  { %673 = vrot.lane.b32.xlu1 %v672_v15, %s2331_s5 }
 0x850   :  { %v626_v16 = vpop.permute.xlu0 %625 }
 0x851   :  { %2024 = vmatmul.mubr.msk.bf16.vlgmr.msra.gmra.mrb[16].mxu0 %vm163_vm2, %v626_v16 }
 0x852   :  { %2036 = vmatpush3.bf16.msra.mxu0 %v2411_v2  ;;  %2039 = vmatprep.mubr.msk.bf16.mxu0 %vm2329_vm0, %v2327_v0 }
 0x853   :  { %2037 = vmatprep.subr.bf16.mxu0 %v2327_v0 }
 0x856   :  { %2038 = vmatpush3.bf16.msra.mxu0 %v2430_v7 }
 0x857   :  { %v674_v17 = vpop.permute.xlu1 %673  ;;  %2051 = vmatprep.subr.bf16.mxu0 %v2327_v0 }
 0x858   :  { %2032 = vmatmul.mubr.msk.bf16.vlgmr.msra.gmra.mrb[16].mxu1 %vm163_vm2, %v674_v17 }
 0x859   :  { %2040 = vmatmul.mubr.msk.bf16.vlgmr.msra.gmra.mrb[20].mxu0 %vm163_vm2, %v674_v17  ;;  %2044 = vmatpush3.bf16.msra.mxu1 %v2462_v29 }
 0x85a   :  { %2045 = vmatprep.subr.bf16.mxu1 %v2327_v0  ;;  %2052 = vmatpush3.bf16.msra.mxu0 %v2467_v30 }
 0x85b   :  { %2047 = vmatprep.mubr.msk.bf16.mxu1 %vm2329_vm0, %v2327_v0  ;;  %2053 = vmatprep.subr.bf16.mxu0 %v2327_v0 }
 0x85c   :  { %2055 = vmatprep.mubr.msk.bf16.mxu0 %vm2329_vm0, %v2327_v0 }
 0x85d   :  { %2046 = vmatpush3.bf16.msra.mxu1 %v2473_v31 }
 0x85e   :  { %2054 = vmatpush3.bf16.msra.mxu0 %v2483_v33  ;;  %2059 = vmatprep.subr.bf16.mxu1 %v2327_v0 }
 0x85f   :  { %2067 = vmatprep.subr.bf16.mxu0 %v2327_v0 }
 0x924   :  { %v664_v18 = vpop.f32.mrb[16].mxu0 }
 0x925   :  { %v2025_v19 = vpop.f32.mrb[17].mxu0 }
 0x926   :  { %v667_v21 = vpop.f32.mrb[18].mxu0 }
 0x927   :  { %v2026_v22 = vpop.f32.mrb[19].mxu0 }
 0x92b   :  { %v712_v23 = vpop.f32.mrb[16].mxu1 }
 0x92c   :  { %v713_v24 = vadd.f32 %v712_v23, %v664_v18  ;;  %v773_v25 = vpop.f32.mrb[20].mxu0  ;;  %v2033_v26 = vpop.f32.mrb[17].mxu1 }
 0x92d   :  { %v780_v27 = vrot.slane %v773_v25, 5  ;;  %v2041_v28 = vpop.f32.mrb[21].mxu0  ;;  %v715_v32 = vpop.f32.mrb[18].mxu1 }
 0x92e   :  { %v718_v34 = vadd.f32 %v713_v24, %v2516_v44  ;;  %v776_v35 = vpop.f32.mrb[22].mxu0  ;;  %v2034_v36 = vpop.f32.mrb[19].mxu1 }
 0x92f   :  { %v782_v37 = vadd.f32 %v780_v27, %v2447_v12  ;;  %v2042_v38 = vpop.f32.mrb[23].mxu0 }
 0x930   :  { %2210 = vtanh.f32 %v718_v34 }
 0x931   :  { %2212 = vtanh.f32 %v782_v37 }
 0x93a   :  { %v2211_v39 = vpop.eup %2210 }
 0x93b   :  { %v2213_v40 = vpop.eup %2212  ;;  %724 = vrot.lane.b32.xlu1 %v2211_v39, %s2330_s20  ;;  %v720_v41 = vmul.f32 0.5, %v2211_v39 }
 0x93c   :  { %791 = vrot.lane.b32.xlu0 %v2213_v40, %s2330_s20  ;;  %v784_v42 = vmul.f32 0.5, %v2213_v40 }
 0x93d   :  { %v721_v43 = vadd.f32 0.5, %v720_v41 }
 0x93e   :  { %v785_v46 = vadd.f32 0.5, %v784_v42 }
 0x93f   :  { %v722_v51 = vmul.f32 %v721_v43, %v2571_v61 }
 0x940   :  { %v789_v53 = vmul.f32 %v787_v50, %v785_v46 }
 0x9ad   :  { %v725_v45 = vpop.permute.xlu1 %724 }
 0x9ae   :  { %v727_v47 = vmul.f32 %v725_v45, %v721_v43  ;;  %v792_v48 = vpop.permute.xlu0 %791 }
 0x9af   :  { %v794_v49 = vmul.f32 %v792_v48, %v785_v46 }
 0x9b0   :  { %729 = vrot.lane.b32.xlu1 %v727_v47, %s2331_s5 }
 0x9b1   :  { %796 = vrot.lane.b32.xlu0 %v794_v49, %s2331_s5 }
 0xa22   :  { %v730_v52 = vpop.permute.xlu1 %729 }
 0xa23   :  { %v2615_v54 = vadd.f32 %v730_v52, %v722_v51  ;;  %v797_v55 = vpop.permute.xlu0 %796 }
 0xa24   :  { %v2617_v56 = vadd.f32 %v797_v55, %v789_v53 }
 0xa25   :  { %2214 = vtanh.f32 %v2615_v54 }
 0xa26   :  { %2216 = vtanh.f32 %v2617_v56 }
 0xa2f   :  { %v2215_v57 = vpop.eup %2214 }
 0xa30   :  { %v2217_v58 = vpop.eup %2216  ;;  %735 = vrot.lane.b32.xlu1 %v2215_v57, %s2330_s20 }
 0xa31   :  { %802 = vrot.lane.b32.xlu0 %v2217_v58, %s2330_s20 }
 0xaa2   :  { %v736_v60 = vpop.permute.xlu1 %735 }
 0xaa3   :  { %v738_v61 = vmul.f32 %v736_v60, %v721_v43  ;;  %v803_v62 = vpop.permute.xlu0 %802 }
 0xaa4   :  { %v805_v63 = vmul.f32 %v803_v62, %v785_v46  ;;  %v972_v46 = vrot.slane %v2617_v56, 7 }
 0xaa5   :  { %v806_v3 = vpack.c.bf16 %v738_v61, %v738_v61  ;;  %v1664_v4 = vrot.slane %v738_v61, 6 }
 0xaa6   :  { %v853_v5 = vpack.c.bf16 %v805_v63, %v805_v63 }
 0xaa7   :  { %808 = vrot.lane.b32.xlu0 %v806_v3, %s2331_s5  ;;  %v2627_v8 = vsel %vm1683_vm4, %v1682_v6, %v1664_v4 }
 0xaa8   :  { %v855_v10 = vshrl.u32 %v853_v5, 16 }
 0xaaa   :  { %v857_v11 = vrot.slane %v855_v10, 1 }
 0xaac   :  { %858 = vrot.lane.b32.xlu1 %v857_v11, %s2331_s5 }
 0xb19   :  { %v809_v9 = vpop.permute.xlu0 %808 }
 0xb1a   :  { %2048 = vmatmul.mubr.msk.bf16.vlgmr.msra.gmra.mrb[20].mxu1 %vm163_vm2, %v809_v9 }
 0xb1b   :  { %2060 = vmatpush3.bf16.msra.mxu1 %v2411_v2  ;;  %2063 = vmatprep.mubr.msk.bf16.mxu1 %vm2329_vm0, %v2327_v0 }
 0xb1c   :  { %2061 = vmatprep.subr.bf16.mxu1 %v2327_v0 }
 0xb1e   :  { %v859_v13 = vpop.permute.xlu1 %858 }
 0xb1f   :  { %2056 = vmatmul.mubr.msk.bf16.vlgmr.msra.gmra.mrb[24].mxu0 %vm163_vm2, %v859_v13  ;;  %2062 = vmatpush3.bf16.msra.mxu1 %v2430_v7 }
 0xb20   :  { %2068 = vmatpush3.bf16.msra.mxu0 %v2462_v29  ;;  %2075 = vmatprep.subr.bf16.mxu1 %v2327_v0 }
 0xb21   :  { %2069 = vmatprep.subr.bf16.mxu0 %v2327_v0  ;;  %2071 = vmatprep.mubr.msk.bf16.mxu0 %vm2329_vm0, %v2327_v0 }
 0xb22   :  { %2064 = vmatmul.mubr.msk.bf16.vlgmr.msra.gmra.mrb[24].mxu1 %vm163_vm2, %v859_v13 }
 0xb23   :  { %2076 = vmatpush3.bf16.msra.mxu1 %v2467_v30  ;;  %2079 = vmatprep.mubr.msk.bf16.mxu1 %vm2329_vm0, %v2327_v0 }
 0xb24   :  { %2070 = vmatpush3.bf16.msra.mxu0 %v2473_v31  ;;  %2077 = vmatprep.subr.bf16.mxu1 %v2327_v0 }
 0xb25   :  { %2083 = vmatprep.subr.bf16.mxu0 %v2327_v0 }
 0xb27   :  { %2078 = vmatpush3.bf16.msra.mxu1 %v2483_v33 }
 0xb28   :  { %2091 = vmatprep.subr.bf16.mxu1 %v2327_v0 }
 0xbed   :  { %v847_v20 = vpop.f32.mrb[20].mxu1 }
 0xbee   :  { %v2049_v14 = vpop.f32.mrb[21].mxu1 }
 0xbef   :  { %v850_v15 = vpop.f32.mrb[22].mxu1 }
 0xbf0   :  { %v2050_v16 = vpop.f32.mrb[23].mxu1 }
 0xbf2   :  { %v897_v17 = vpop.f32.mrb[24].mxu0 }
 0xbf3   :  { %v898_v18 = vadd.f32 %v897_v17, %v847_v20  ;;  %v2057_v19 = vpop.f32.mrb[25].mxu0 }
 0xbf4   :  { %v900_v21 = vpop.f32.mrb[26].mxu0 }
 0xbf5   :  { %v903_v22 = vadd.f32 %v898_v18, %v2516_v44  ;;  %v2058_v23 = vpop.f32.mrb[27].mxu0  ;;  %v958_v24 = vpop.f32.mrb[24].mxu1 }
 0xbf6   :  { %v965_v25 = vrot.slane %v958_v24, 4  ;;  %v2065_v26 = vpop.f32.mrb[25].mxu1 }
 0xbf7   :  { %2218 = vtanh.f32 %v903_v22  ;;  %v961_v27 = vpop.f32.mrb[26].mxu1 }
 0xbf8   :  { %v967_v28 = vadd.f32 %v965_v25, %v2447_v12  ;;  %v2066_v32 = vpop.f32.mrb[27].mxu1 }
 0xbfa   :  { %2220 = vtanh.f32 %v967_v28 }
 0xc01   :  { %v2219_v34 = vpop.eup %2218 }
 0xc02   :  { %909 = vrot.lane.b32.xlu0 %v2219_v34, %s2330_s20  ;;  %v905_v36 = vmul.f32 0.5, %v2219_v34 }
 0xc04   :  { %v2221_v35 = vpop.eup %2220  ;;  %v906_v38 = vadd.f32 0.5, %v905_v36 }
 0xc05   :  { %976 = vrot.lane.b32.xlu1 %v2221_v35, %s2330_s20  ;;  %v969_v37 = vmul.f32 0.5, %v2221_v35 }
 0xc06   :  { %v907_v45 = vmul.f32 %v906_v38, %v2615_v54 }
 0xc07   :  { %v970_v41 = vadd.f32 0.5, %v969_v37 }
 0xc09   :  { %v974_v49 = vmul.f32 %v972_v46, %v970_v41 }
 0xc74   :  { %v910_v39 = vpop.permute.xlu0 %909 }
 0xc75   :  { %v912_v40 = vmul.f32 %v910_v39, %v906_v38 }
 0xc77   :  { %914 = vrot.lane.b32.xlu0 %v912_v40, %s2331_s5  ;;  %v977_v42 = vpop.permute.xlu1 %976 }
 0xc78   :  { %v979_v43 = vmul.f32 %v977_v42, %v970_v41 }
 0xc7a   :  { %981 = vrot.lane.b32.xlu1 %v979_v43, %s2331_s5 }
 0xce9   :  { %v915_v47 = vpop.permute.xlu0 %914 }
 0xcea   :  { %v2659_v48 = vadd.f32 %v915_v47, %v907_v45 }
 0xcec   :  { %2222 = vtanh.f32 %v2659_v48  ;;  %v982_v50 = vpop.permute.xlu1 %981 }
 0xced   :  { %v2662_v51 = vadd.f32 %v982_v50, %v974_v49 }
 0xcef   :  { %2224 = vtanh.f32 %v2662_v51  ;;  %v1155_v37 = vrot.slane %v2662_v51, 7 }
 0xcf6   :  { %v2223_v52 = vpop.eup %2222 }
 0xcf7   :  { %920 = vrot.lane.b32.xlu0 %v2223_v52, %s2330_s20 }
 0xcf9   :  { %v2225_v53 = vpop.eup %2224 }
 0xcfa   :  { %987 = vrot.lane.b32.xlu1 %v2225_v53, %s2330_s20 }
 0xd69   :  { %v921_v54 = vpop.permute.xlu0 %920 }
 0xd6a   :  { %v923_v55 = vmul.f32 %v921_v54, %v906_v38 }
 0xd6c   :  { %v991_v56 = vpack.c.bf16 %v923_v55, %v923_v55  ;;  %v1667_v57 = vrot.slane %v923_v55, 5  ;;  %v988_v58 = vpop.permute.xlu1 %987 }
 0xd6d   :  { %v990_v59 = vmul.f32 %v988_v58, %v970_v41 }
 0xd6e   :  { %993 = vrot.lane.b32.xlu0 %v991_v56, %s2331_s5  ;;  %v2669_v60 = vsel %vm1685_vm5, %v2627_v8, %v1667_v57 }
 0xd6f   :  { %v1038_v61 = vpack.c.bf16 %v990_v59, %v990_v59 }
 0xd71   :  { %v1040_v62 = vrot.slane %v1038_v61, 2 }
 0xd73   :  { %1041 = vrot.lane.b32.xlu1 %v1040_v62, %s2331_s5 }
 0xde0   :  { %v994_v63 = vpop.permute.xlu0 %993 }
 0xde1   :  { %2072 = vmatmul.mubr.msk.bf16.vlgmr.msra.gmra.mrb[28].mxu0 %vm163_vm2, %v994_v63 }
 0xde2   :  { %2084 = vmatpush3.bf16.msra.mxu0 %v2411_v2  ;;  %2087 = vmatprep.mubr.msk.bf16.mxu0 %vm2329_vm0, %v2327_v0 }
 0xde3   :  { %2085 = vmatprep.subr.bf16.mxu0 %v2327_v0 }
 0xde5   :  { %v1042_v3 = vpop.permute.xlu1 %1041 }
 0xde6   :  { %2086 = vmatpush3.bf16.msra.mxu0 %v2430_v7  ;;  %2080 = vmatmul.mubr.msk.bf16.vlgmr.msra.gmra.mrb[28].mxu1 %vm163_vm2, %v1042_v3 }
 0xde7   :  { %2092 = vmatpush3.bf16.msra.mxu1 %v2462_v29  ;;  %2099 = vmatprep.subr.bf16.mxu0 %v2327_v0 }
 0xde8   :  { %2093 = vmatprep.subr.bf16.mxu1 %v2327_v0  ;;  %2095 = vmatprep.mubr.msk.bf16.mxu1 %vm2329_vm0, %v2327_v0 }
 0xde9   :  { %2088 = vmatmul.mubr.msk.bf16.vlgmr.msra.gmra.mrb[32].mxu0 %vm163_vm2, %v1042_v3 }
 0xdea   :  { %2100 = vmatpush3.bf16.msra.mxu0 %v2467_v30  ;;  %2103 = vmatprep.mubr.msk.bf16.mxu0 %vm2329_vm0, %v2327_v0 }
 0xdeb   :  { %2094 = vmatpush3.bf16.msra.mxu1 %v2473_v31  ;;  %2101 = vmatprep.subr.bf16.mxu0 %v2327_v0 }
 0xdec   :  { %2107 = vmatprep.subr.bf16.mxu1 %v2327_v0 }
 0xdee   :  { %2102 = vmatpush3.bf16.msra.mxu0 %v2483_v33 }
 0xdef   :  { %2115 = vmatprep.subr.bf16.mxu0 %v2327_v0 }
 0xeb4   :  { %v1032_v4 = vpop.f32.mrb[28].mxu0 }
 0xeb5   :  { %v2073_v5 = vpop.f32.mrb[29].mxu0 }
 0xeb6   :  { %v1035_v6 = vpop.f32.mrb[30].mxu0 }
 0xeb7   :  { %v2074_v8 = vpop.f32.mrb[31].mxu0 }
 0xeb9   :  { %v1080_v10 = vpop.f32.mrb[28].mxu1 }
 0xeba   :  { %v1081_v11 = vadd.f32 %v1080_v10, %v1032_v4  ;;  %v2081_v9 = vpop.f32.mrb[29].mxu1 }
 0xebb   :  { %v1083_v13 = vpop.f32.mrb[30].mxu1 }
 0xebc   :  { %v1086_v20 = vadd.f32 %v1081_v11, %v2516_v44  ;;  %v1141_v14 = vpop.f32.mrb[32].mxu0  ;;  %v2082_v15 = vpop.f32.mrb[31].mxu1 }
 0xebd   :  { %v1148_v16 = vrot.slane %v1141_v14, 3  ;;  %v2089_v17 = vpop.f32.mrb[33].mxu0 }
 0xebe   :  { %2226 = vtanh.f32 %v1086_v20  ;;  %v1144_v18 = vpop.f32.mrb[34].mxu0 }
 0xebf   :  { %v1150_v19 = vadd.f32 %v1148_v16, %v2447_v12  ;;  %v2090_v21 = vpop.f32.mrb[35].mxu0 }
 0xec1   :  { %2228 = vtanh.f32 %v1150_v19 }
 0xec8   :  { %v2227_v22 = vpop.eup %2226 }
 0xec9   :  { %1092 = vrot.lane.b32.xlu1 %v2227_v22, %s2330_s20  ;;  %v1088_v24 = vmul.f32 0.5, %v2227_v22 }
 0xecb   :  { %v2229_v23 = vpop.eup %2228  ;;  %v1089_v26 = vadd.f32 0.5, %v1088_v24 }
 0xecc   :  { %1159 = vrot.lane.b32.xlu0 %v2229_v23, %s2330_s20  ;;  %v1152_v25 = vmul.f32 0.5, %v2229_v23 }
 0xecd   :  { %v1090_v36 = vmul.f32 %v1089_v26, %v2659_v48 }
 0xece   :  { %v1153_v32 = vadd.f32 0.5, %v1152_v25 }
 0xed0   :  { %v1157_v40 = vmul.f32 %v1155_v37, %v1153_v32 }
 0xf3b   :  { %v1093_v27 = vpop.permute.xlu1 %1092 }
 0xf3c   :  { %v1095_v28 = vmul.f32 %v1093_v27, %v1089_v26 }
 0xf3e   :  { %v1160_v34 = vpop.permute.xlu0 %1159  ;;  %1097 = vrot.lane.b32.xlu1 %v1095_v28, %s2331_s5 }
 0xf3f   :  { %v1162_v35 = vmul.f32 %v1160_v34, %v1153_v32 }
 0xf41   :  { %1164 = vrot.lane.b32.xlu0 %v1162_v35, %s2331_s5 }
 0xfb0   :  { %v1098_v38 = vpop.permute.xlu1 %1097 }
 0xfb1   :  { %v2701_v39 = vadd.f32 %v1098_v38, %v1090_v36 }
 0xfb3   :  { %2230 = vtanh.f32 %v2701_v39  ;;  %v1165_v41 = vpop.permute.xlu0 %1164 }
 0xfb4   :  { %v2704_v42 = vadd.f32 %v1165_v41, %v1157_v40 }
 0xfb6   :  { %2232 = vtanh.f32 %v2704_v42  ;;  %v1340_v23 = vrot.slane %v2704_v42, 7 }
 0xfbd   :  { %v2231_v43 = vpop.eup %2230 }
 0xfbe   :  { %1103 = vrot.lane.b32.xlu1 %v2231_v43, %s2330_s20 }
 0xfc0   :  { %v2233_v45 = vpop.eup %2232 }
 0xfc1   :  { %1170 = vrot.lane.b32.xlu0 %v2233_v45, %s2330_s20 }
0x1030   :  { %v1104_v46 = vpop.permute.xlu1 %1103 }
0x1031   :  { %v1106_v47 = vmul.f32 %v1104_v46, %v1089_v26 }
0x1033   :  { %v1174_v48 = vpack.c.bf16 %v1106_v47, %v1106_v47  ;;  %v1670_v49 = vrot.slane %v1106_v47, 4  ;;  %v1171_v50 = vpop.permute.xlu0 %1170  ;;  %v2254_v47 = vld [vmem:[%s2864_s4] sm:$0xff]  }
0x1034   :  { %v1173_v51 = vmul.f32 %v1171_v50, %v1153_v32 }
0x1035   :  { %1176 = vrot.lane.b32.xlu0 %v1174_v48, %s2331_s5  ;;  %v2711_v52 = vsel %vm1687_vm6, %v2669_v60, %v1670_v49  ;;  %v2255_v49 = vld [vmem:[%s2864_s4 + $0x8] sm:$0xff]  }
0x1036   :  { %v1221_v53 = vpack.c.bf16 %v1173_v51, %v1173_v51 }
0x1038   :  { %v1223_v54 = vshrl.u32 %v1221_v53, 16 }
0x103a   :  { %v1225_v55 = vrot.slane %v1223_v54, 2 }
0x103c   :  { %1226 = vrot.lane.b32.xlu1 %v1225_v55, %s2331_s5 }
0x10a7   :  { %v1177_v56 = vpop.permute.xlu0 %1176 }
0x10a8   :  { %2096 = vmatmul.mubr.msk.bf16.vlgmr.msra.gmra.mrb[32].mxu1 %vm163_vm2, %v1177_v56 }
0x10a9   :  { %2108 = vmatpush3.bf16.msra.mxu1 %v2411_v2  ;;  %2111 = vmatprep.mubr.msk.bf16.mxu1 %vm2329_vm0, %v2327_v0 }
0x10aa   :  { %2109 = vmatprep.subr.bf16.mxu1 %v2327_v0 }
0x10ad   :  { %2110 = vmatpush3.bf16.msra.mxu1 %v2430_v7 }
0x10ae   :  { %v1227_v57 = vpop.permute.xlu1 %1226  ;;  %2123 = vmatprep.subr.bf16.mxu1 %v2327_v0 }
0x10af   :  { %2104 = vmatmul.mubr.msk.bf16.vlgmr.msra.gmra.mrb[36].mxu0 %vm163_vm2, %v1227_v57 }
0x10b0   :  { %2112 = vmatmul.mubr.msk.bf16.vlgmr.msra.gmra.mrb[36].mxu1 %vm163_vm2, %v1227_v57  ;;  %2116 = vmatpush3.bf16.msra.mxu0 %v2462_v29 }
0x10b1   :  { %2117 = vmatprep.subr.bf16.mxu0 %v2327_v0  ;;  %2124 = vmatpush3.bf16.msra.mxu1 %v2467_v30 }
0x10b2   :  { %2119 = vmatprep.mubr.msk.bf16.mxu0 %vm2329_vm0, %v2327_v0  ;;  %2125 = vmatprep.subr.bf16.mxu1 %v2327_v0 }
0x10b3   :  { %2127 = vmatprep.mubr.msk.bf16.mxu1 %vm2329_vm0, %v2327_v0 }
0x10b4   :  { %2118 = vmatpush3.bf16.msra.mxu0 %v2473_v31 }
0x10b5   :  { %2131 = vmatprep.subr.bf16.mxu0 %v2327_v0  ;;  %2126 = vmatpush3.bf16.msra.mxu1 %v2483_v33 }
0x10b6   :  { %2139 = vmatprep.subr.bf16.mxu1 %v2327_v0 }
0x117b   :  { %v1215_v2 = vpop.f32.mrb[32].mxu1 }
0x117c   :  { %v2097_v7 = vpop.f32.mrb[33].mxu1 }
0x117d   :  { %v1218_v58 = vpop.f32.mrb[34].mxu1 }
0x117e   :  { %v2098_v59 = vpop.f32.mrb[35].mxu1 }
0x1182   :  { %v1265_v60 = vpop.f32.mrb[36].mxu0 }
0x1183   :  { %v1266_v61 = vadd.f32 %v1265_v60, %v1215_v2  ;;  %v2105_v62 = vpop.f32.mrb[37].mxu0  ;;  %v1326_v63 = vpop.f32.mrb[36].mxu1 }
0x1184   :  { %v1268_v3 = vpop.f32.mrb[38].mxu0  ;;  %v1333_v4 = vrot.slane %v1326_v63, 2  ;;  %v2113_v5 = vpop.f32.mrb[37].mxu1 }
0x1185   :  { %v1271_v6 = vadd.f32 %v1266_v61, %v2516_v44  ;;  %v2106_v8 = vpop.f32.mrb[39].mxu0  ;;  %v1329_v10 = vpop.f32.mrb[38].mxu1 }
0x1186   :  { %v1335_v11 = vadd.f32 %v1333_v4, %v2447_v12  ;;  %v2114_v9 = vpop.f32.mrb[39].mxu1 }
0x1187   :  { %2234 = vtanh.f32 %v1271_v6 }
0x1188   :  { %2236 = vtanh.f32 %v1335_v11 }
0x1191   :  { %v2235_v13 = vpop.eup %2234 }
0x1192   :  { %v2237_v20 = vpop.eup %2236  ;;  %1277 = vrot.lane.b32.xlu0 %v2235_v13, %s2330_s20  ;;  %v1273_v14 = vmul.f32 0.5, %v2235_v13 }
0x1193   :  { %1344 = vrot.lane.b32.xlu1 %v2237_v20, %s2330_s20  ;;  %v1337_v15 = vmul.f32 0.5, %v2237_v20 }
0x1194   :  { %v1274_v16 = vadd.f32 0.5, %v1273_v14 }
0x1195   :  { %v1338_v18 = vadd.f32 0.5, %v1337_v15 }
0x1196   :  { %v1275_v24 = vmul.f32 %v1274_v16, %v2701_v39 }
0x1197   :  { %v1342_v26 = vmul.f32 %v1340_v23, %v1338_v18 }
0x1204   :  { %v1278_v17 = vpop.permute.xlu0 %1277 }
0x1205   :  { %v1280_v19 = vmul.f32 %v1278_v17, %v1274_v16  ;;  %v1345_v21 = vpop.permute.xlu1 %1344 }
0x1206   :  { %v1347_v22 = vmul.f32 %v1345_v21, %v1338_v18 }
0x1207   :  { %1282 = vrot.lane.b32.xlu0 %v1280_v19, %s2331_s5 }
0x1208   :  { %1349 = vrot.lane.b32.xlu1 %v1347_v22, %s2331_s5 }
0x1279   :  { %v1283_v25 = vpop.permute.xlu0 %1282 }
0x127a   :  { %v2743_v27 = vadd.f32 %v1283_v25, %v1275_v24  ;;  %v1350_v28 = vpop.permute.xlu1 %1349 }
0x127b   :  { %v2745_v32 = vadd.f32 %v1350_v28, %v1342_v26 }
0x127c   :  { %2238 = vtanh.f32 %v2743_v27 }
0x127d   :  { %2240 = vtanh.f32 %v2745_v32  ;;  %v1523_v9 = vrot.slane %v2745_v32, 7 }
0x1286   :  { %v2239_v34 = vpop.eup %2238 }
0x1287   :  { %v2241_v35 = vpop.eup %2240  ;;  %1288 = vrot.lane.b32.xlu0 %v2239_v34, %s2330_s20 }
0x1288   :  { %1355 = vrot.lane.b32.xlu1 %v2241_v35, %s2330_s20 }
0x12f9   :  { %v1289_v36 = vpop.permute.xlu0 %1288 }
0x12fa   :  { %v1291_v37 = vmul.f32 %v1289_v36, %v1274_v16  ;;  %v1356_v38 = vpop.permute.xlu1 %1355 }
0x12fb   :  { %v1358_v39 = vmul.f32 %v1356_v38, %v1338_v18 }
0x12fc   :  { %v1359_v40 = vpack.c.bf16 %v1291_v37, %v1291_v37  ;;  %v1673_v41 = vrot.slane %v1291_v37, 3 }
0x12fd   :  { %v1406_v42 = vpack.c.bf16 %v1358_v39, %v1358_v39 }
0x12fe   :  { %1361 = vrot.lane.b32.xlu0 %v1359_v40, %s2331_s5  ;;  %v2753_v43 = vsel %vm1689_vm7, %v2711_v52, %v1673_v41 }
0x12ff   :  { %v1408_v45 = vrot.slane %v1406_v42, 3  ;;  %v2256_v42 = vld [vmem:[%s2868_s8] sm:$0x1] }
0x1301   :  { %1409 = vrot.lane.b32.xlu1 %v1408_v45, %s2331_s5 }
0x1370   :  { %v1362_v46 = vpop.permute.xlu0 %1361 }
0x1371   :  { %2120 = vmatmul.mubr.msk.bf16.vlgmr.msra.gmra.mrb[40].mxu0 %vm163_vm2, %v1362_v46 }
0x1372   :  { %2132 = vmatpush3.bf16.msra.mxu0 %v2254_v47  ;;  %2135 = vmatprep.mubr.msk.bf16.mxu0 %vm2329_vm0, %v2327_v0 }
0x1373   :  { %v1410_v48 = vpop.permute.xlu1 %1409  ;;  %2133 = vmatprep.subr.bf16.mxu0 %v2327_v0 }
0x1374   :  { %2128 = vmatmul.mubr.msk.bf16.vlgmr.msra.gmra.mrb[40].mxu1 %vm163_vm2, %v1410_v48 }
0x1375   :  { %2140 = vmatpush3.bf16.msra.mxu1 %v2462_v29  ;;  %2143 = vmatprep.mubr.msk.bf16.mxu1 %vm2329_vm0, %v2327_v0 }
0x1376   :  { %2134 = vmatpush3.bf16.msra.mxu0 %v2255_v49  ;;  %2141 = vmatprep.subr.bf16.mxu1 %v2327_v0 }
0x1377   :  { %2147 = vmatprep.subr.bf16.mxu0 %v2327_v0 }
0x1379   :  { %2136 = vmatmul.mubr.msk.bf16.vlgmr.msra.gmra.mrb[44].mxu0 %vm163_vm2, %v1410_v48  ;;  %2142 = vmatpush3.bf16.msra.mxu1 %v2473_v31 }
0x137a   :  { %2148 = vmatpush3.bf16.msra.mxu0 %v2467_v30  ;;  %2151 = vmatprep.mubr.msk.bf16.mxu0 %vm2329_vm0, %v2327_v0 }
0x137b   :  { %2149 = vmatprep.subr.bf16.mxu0 %v2327_v0  ;;  %2169 = vmatprep.subr.bf16.mxu1 %v2328_v1 }
0x137e   :  { %2150 = vmatpush3.bf16.msra.mxu0 %v2483_v33 }
0x1444   :  { %v1400_v29 = vpop.f32.mrb[40].mxu0 }
0x1445   :  { %v2121_v50 = vpop.f32.mrb[41].mxu0 }
0x1446   :  { %v1403_v51 = vpop.f32.mrb[42].mxu0 }
0x1447   :  { %v2122_v52 = vpop.f32.mrb[43].mxu0  ;;  %v1448_v53 = vpop.f32.mrb[40].mxu1 }
0x1448   :  { %v1449_v54 = vadd.f32 %v1448_v53, %v1400_v29  ;;  %v2129_v55 = vpop.f32.mrb[41].mxu1 }
0x1449   :  { %v1451_v56 = vpop.f32.mrb[42].mxu1  ;;  %v60_v55 = vld [vmem:[%s2869_s9] sm:$0xff] }
0x144a   :  { %v1454_v31 = vadd.f32 %v1449_v54, %v2516_v44  ;;  %v2130_v30 = vpop.f32.mrb[43].mxu1  ;;  %v61_v56 = vld [vmem:[%s2869_s9 + $0x8] sm:$0xff] }
0x144b   :  { %v2170_v30 = vpack.c.bf16 %v61_v56, %v60_v55 }
0x144c   :  { %2242 = vtanh.f32 %v1454_v31  ;;  %v1509_v57 = vpop.f32.mrb[44].mxu0  ;;  %v62_v31 = vld [vmem:[%s2869_s9 + $0x10] sm:$0xff] }
0x144d   :  { %v1516_v2 = vrot.slane %v1509_v57, 1  ;;  %v2137_v7 = vpop.f32.mrb[45].mxu0  ;;  %v63_v57 = vld [vmem:[%s2869_s9 + $0x18] sm:$0xff]  ;;  %s2332_s9 = smov 96  }
0x144e   :  { %v1512_v58 = vpop.f32.mrb[46].mxu0  ;;  %v2173_v7 = vpack.c.bf16 %v63_v57, %v62_v31 }
0x144f   :  { %v1518_v59 = vadd.f32 %v1516_v2, %v2447_v12  ;;  %v2138_v60 = vpop.f32.mrb[47].mxu0 }
0x1451   :  { %2244 = vtanh.f32 %v1518_v59 }
0x1456   :  { %v2243_v33 = vpop.eup %2242 }
0x1457   :  { %1460 = vrot.lane.b32.xlu1 %v2243_v33, %s2330_s20  ;;  %v1456_v62 = vmul.f32 0.5, %v2243_v33 }
0x1459   :  { %v1457_v63 = vadd.f32 0.5, %v1456_v62 }
0x145b   :  { %v2245_v61 = vpop.eup %2244  ;;  %v1458_v12 = vmul.f32 %v1457_v63, %v2743_v27 }
0x145c   :  { %1527 = vrot.lane.b32.xlu0 %v2245_v61, %s2330_s20  ;;  %v1520_v44 = vmul.f32 0.5, %v2245_v61 }
0x145e   :  { %v1521_v5 = vadd.f32 0.5, %v1520_v44 }
0x1460   :  { %v1525_v13 = vmul.f32 %v1523_v9, %v1521_v5 }
0x14c9   :  { %v1461_v3 = vpop.permute.xlu1 %1460 }
0x14ca   :  { %v1463_v4 = vmul.f32 %v1461_v3, %v1457_v63 }
0x14cc   :  { %1465 = vrot.lane.b32.xlu1 %v1463_v4, %s2331_s5 }
0x14ce   :  { %v1528_v6 = vpop.permute.xlu0 %1527 }
0x14cf   :  { %v1530_v8 = vmul.f32 %v1528_v6, %v1521_v5 }
0x14d1   :  { %1532 = vrot.lane.b32.xlu0 %v1530_v8, %s2331_s5 }
0x153e   :  { %v1466_v10 = vpop.permute.xlu1 %1465 }
0x153f   :  { %v1468_v11 = vadd.f32 %v1466_v10, %v1458_v12 }
0x1541   :  { %2246 = vtanh.f32 %v1468_v11 }
0x1543   :  { %v1533_v20 = vpop.permute.xlu0 %1532 }
0x1544   :  { %v1535_v14 = vadd.f32 %v1533_v20, %v1525_v13 }
0x1546   :  { %2248 = vtanh.f32 %v1535_v14  ;;  %v1790_v52 = vrot.slane %v1535_v14, 7 }
0x154b   :  { %v2247_v15 = vpop.eup %2246 }
0x154c   :  { %1471 = vrot.lane.b32.xlu1 %v2247_v15, %s2330_s20 }
0x1550   :  { %v2249_v16 = vpop.eup %2248 }
0x1551   :  { %1538 = vrot.lane.b32.xlu0 %v2249_v16, %s2330_s20 }
0x15be   :  { %v1472_v17 = vpop.permute.xlu1 %1471 }
0x15bf   :  { %v1474_v18 = vmul.f32 %v1472_v17, %v1457_v63 }
0x15c1   :  { %v1542_v19 = vpack.c.bf16 %v1474_v18, %v1474_v18  ;;  %v1676_v21 = vrot.slane %v1474_v18, 2 }
0x15c3   :  { %v1539_v22 = vpop.permute.xlu0 %1538  ;;  %1544 = vrot.lane.b32.xlu0 %v1542_v19, %s2331_s5  ;;  %v1692_v23 = vsel %vm1691_vm8, %v2753_v43, %v1676_v21 }
0x15c4   :  { %v1541_v24 = vmul.f32 %v1539_v22, %v1521_v5 }
0x15c6   :  { %v1589_v25 = vpack.c.bf16 %v1541_v24, %v1541_v24  ;;  %v1778_v60 = vrot.slane %v1541_v24, 7 }
0x15c8   :  { %v1591_v26 = vshrl.u32 %v1589_v25, 16 }
0x15ca   :  { %v1593_v27 = vrot.slane %v1591_v26, 3 }
0x15cc   :  { %1594 = vrot.lane.b32.xlu1 %v1593_v27, %s2331_s5 }
0x1635   :  { %v1545_v28 = vpop.permute.xlu0 %1544 }
0x1636   :  { %2144 = vmatmul.mubr.msk.bf16.vlgmr.msra.gmra.mrb[44].mxu1 %vm163_vm2, %v1545_v28 }
0x1637   :  { %2163 = vmatprep.mubr.msk.f32.mxu1 %vm2329_vm0, %v2327_v0  ;;  %2171 = vmatpush3.bf16.msra.mxu1 %v2170_v30 }
0x1638   :  { %2172 = vmatprep.subr.bf16.mxu1 %v2328_v1 }
0x163b   :  { %2174 = vmatpush3.bf16.msra.mxu1 %v2173_v7 }
0x163e   :  { %v1595_v32 = vpop.permute.xlu1 %1594 }
0x163f   :  { %2152 = vmatmul.mubr.msk.bf16.vlgmr.msra.gmra.mrb[48].mxu0 %vm163_vm2, %v1595_v32 }
0x1709   :  { %v1583_v34 = vpop.f32.mrb[44].mxu1 }
0x170a   :  { %v2145_v35 = vpop.f32.mrb[45].mxu1 }
0x170b   :  { %v1586_v36 = vpop.f32.mrb[46].mxu1 }
0x170c   :  { %v2146_v37 = vpop.f32.mrb[47].mxu1 }
0x1712   :  { %v1633_v38 = vpop.f32.mrb[48].mxu0 }
0x1713   :  { %v1634_v39 = vadd.f32 %v1633_v38, %v1583_v34  ;;  %v2153_v40 = vpop.f32.mrb[49].mxu0 }
0x1714   :  { %v1636_v41 = vpop.f32.mrb[50].mxu0 }
0x1715   :  { %v1639_v43 = vadd.f32 %v2256_v42, %v1634_v39  ;;  %v2154_v45 = vpop.f32.mrb[51].mxu0 }
0x1717   :  { %2250 = vtanh.f32 %v1639_v43 }
0x1721   :  { %v2251_v46 = vpop.eup %2250 }
0x1722   :  { %1645 = vrot.lane.b32.xlu0 %v2251_v46, %s2330_s20  ;;  %v1641_v0 = vmul.f32 0.5, %v2251_v46 }
0x1724   :  { %v1642_v47 = vadd.f32 0.5, %v1641_v0 }
0x1726   :  { %v1643_v29 = vmul.f32 %v1642_v47, %v1468_v11 }
0x1794   :  { %v1646_v48 = vpop.permute.xlu0 %1645 }
0x1795   :  { %v1648_v49 = vmul.f32 %v1646_v48, %v1642_v47 }
0x1797   :  { %1650 = vrot.lane.b32.xlu1 %v1648_v49, %s2331_s5 }
0x1809   :  { %v1651_v50 = vpop.permute.xlu1 %1650 }
0x180a   :  { %v1653_v51 = vadd.f32 %v1651_v50, %v1643_v29 }
0x180c   :  { %2252 = vtanh.f32 %v1653_v51  ;;  %v1793_v53 = vrot.slane %v1653_v51, 7 }
0x180e   :  { %v1795_v54 = vsel %vm1681_vm3, %v1790_v52, %v1793_v53 }
0x1816   :  { %v2253_v2 = vpop.eup %2252 }
0x1817   :  { %1656 = vrot.lane.b32.xlu0 %v2253_v2, %s2330_s20  ;;  %s2333_s20 = smov [#allocation4]  }
0x1818   :  { %s1817_s27 = sshll.u32 %s2333_s20, 4  ;;  %s1818_s27 = int_to_ptr.vmem [resolvable:$true] %s1817_s27 }
0x1819   :  { %s2257_s28 = scalar_lea.vmem %s1818_s27, 32  ;;  %p2262_p1 = scmp.lt.s32.totalorder %s1818_s27, %s1818_s27 }
0x181a   :  { %p2258_p0 = scmp.ne.s32.totalorder %s1818_s27, %s2257_s28  ;;  %p2263_p2 = scmp.lt.s32.totalorder %s2257_s28, %s2257_s28 }
0x181c   :  { %p2264_p3 = por %p2263_p2, %p2262_p1 }
0x181e   :  { %p2265_p4 = pnand %p2264_p3, %p2258_p0 }
0x1889   :  { %v1657_v58 = vpop.permute.xlu0 %1656 }
0x188a   :  { %v1659_v59 = vmul.f32 %v1657_v58, %v1642_v47 }
0x188c   :  { %v1679_v33 = vrot.slane %v1659_v59, 1  ;;  %v1780_v61 = vrot.slane %v1659_v59, 7 }
0x188e   :  { %v1782_v62 = vsel %vm1681_vm3, %v1778_v60, %v1780_v61  ;;  %v1694_v63 = vsel %vm1693_vm9, %v1692_v23, %v1679_v33 }
0x188f   :  { %1784 = vrot.lane.b32.xlu0 %v1782_v62, %s2331_s5  ;;  %1702 = vrot.lane.b32.xlu1 %v1694_v63, %s2331_s5 }
0x1893   :  { %1797 = vrot.lane.b32.xlu1 %v1795_v54, %s2332_s9 }
0x1901   :  { %v1785_v3 = vpop.permute.xlu0 %1784  ;;  %v1703_v44 = vpop.permute.xlu1 %1702 }
0x1902   :  { %1788 = vst.msk [vmem:[#allocation4] sm:$0x3] %vm1787_vm10, %v1785_v3  ;;  %2164 = vmatmul.mubr.msk.f32.vlgmr.msra.gmra.mrb[48].mxu1 %vm163_vm2, %v1703_v44 }
0x1905   :  { %v1798_v1 = vpop.permute.xlu1 %1797 }
0x1906   :  { %1800 = vst.msk [vmem:[#allocation6] sm:$0x3] %vm1787_vm10, %v1798_v1 }
0x1907   :  { %2268 = shalt.err (!%p2265_p4)
}
0x1908   :  { %s2269_s30 = scalar_lea.hbm %s2872_s12, 32 }
0x1909   :  { %p2270_p5 = scmp.ne.s32.totalorder %s2872_s12, %s2269_s30  ;;  %p2273_p6 = scmp.lt.u32.totalorder %s2269_s30, %s2872_s12 }
0x190b   :  { %p2275_p7 = pnand %p2273_p6, %p2270_p5 }
0x190d   :  { %2278 = shalt.err (!%p2275_p7)
}
0x190e   :  { %1820 = dma.vmem_to_hbm [thread:$0]  %s1818_s27, 32, %s2872_s12, [#allocation5]  }
0x190f   :  { %s2334_s2 = smov [#allocation6]  }
0x1910   :  { %s1827_s17 = sshll.u32 %s2334_s2, 4  ;;  %s1828_s17 = int_to_ptr.vmem [resolvable:$true] %s1827_s17 }
0x1911   :  { %s2279_s3 = scalar_lea.vmem %s1828_s17, 32  ;;  %p2284_p9 = scmp.lt.s32.totalorder %s1828_s17, %s1828_s17 }
0x1912   :  { %p2280_p8 = scmp.ne.s32.totalorder %s1828_s17, %s2279_s3  ;;  %p2285_p10 = scmp.lt.s32.totalorder %s2279_s3, %s2279_s3 }
0x1914   :  { %p2286_p11 = por %p2285_p10, %p2284_p9 }
0x1916   :  { %p2287_p12 = pnand %p2286_p11, %p2280_p8 }
0x1918   :  { %2290 = shalt.err (!%p2287_p12)
}
0x1919   :  { %s2291_s0 = scalar_lea.hbm %s2873_s13, 32 }
0x191a   :  { %p2292_p13 = scmp.ne.s32.totalorder %s2873_s13, %s2291_s0  ;;  %p2295_p0 = scmp.lt.u32.totalorder %s2291_s0, %s2873_s13 }
0x191c   :  { %p2297_p1 = pnand %p2295_p0, %p2292_p13 }
0x191e   :  { %2300 = shalt.err (!%p2297_p1)
}
0x191f   :  { %1830 = dma.vmem_to_hbm [thread:$0]  %s1828_s17, 32, %s2873_s13, [#allocation5]   ;;  %v1874_v4 = vld [vmem:[%s2870_s10] ss:$0 sm:$0xff] }
0x1920   :  { %s2335_s26 = smov [#allocation2]  }
0x1921   :  { %s1807_s9 = sshll.u32 %s2335_s26, 4  ;;  %s1808_s9 = int_to_ptr.vmem [resolvable:$true] %s1807_s9 }
0x1922   :  { %s2301_s20 = scalar_lea.vmem %s1808_s9, 128  ;;  %p2306_p3 = scmp.lt.s32.totalorder %s1808_s9, %s1808_s9 }
0x1923   :  { %p2302_p2 = scmp.ne.s32.totalorder %s1808_s9, %s2301_s20  ;;  %p2307_p4 = scmp.lt.s32.totalorder %s2301_s20, %s2301_s20 }
0x1925   :  { %p2308_p5 = por %p2307_p4, %p2306_p3 }
0x1927   :  { %p2309_p6 = pnand %p2308_p5, %p2302_p2 }
0x19d5   :  { %v1772_v5 = vpop.f32.mrb[48].mxu1 }
0x19d6   :  { %v1773_v6 = vadd.f32 %v1874_v4, %v1772_v5  ;;  %v2165_v8 = vpop.f32.mrb[49].mxu1 }
0x19d8   :  { %1776 = vst [vmem:[#allocation2] sm:$0xff] %v1773_v6 }
0x19d9   :  { %2312 = shalt.err (!%p2309_p6)
}
0x19da   :  { %s2313_s28 = scalar_lea.hbm %s2871_s11, 128 }
0x19db   :  { %p2314_p7 = scmp.ne.s32.totalorder %s2871_s11, %s2313_s28  ;;  %p2317_p8 = scmp.lt.u32.totalorder %s2313_s28, %s2871_s11 }
0x19dd   :  { %p2319_p9 = pnand %p2317_p8, %p2314_p7 }
0x19df   :  { %2322 = shalt.err (!%p2319_p9)
}
0x19e0   :  { %1810 = dma.vmem_to_hbm [thread:$0]  %s1808_s9, 128, %s2871_s11, [#allocation3]  }
0x19e1   :  { %2323 = dma.done.wait [#allocation3], 128  }
0x19e2   :  { %2324 = vsyncadd [#allocation3], 4294967168 }
0x19e3   :  { %2325 = dma.done.wait [#allocation5], 64  }
0x19e4   :  { %2326 = vsyncadd [#allocation5], 4294967232 }
0x19e5   :  { %1840 = vsyncpa [#allocation3], 1 }
0x19e6   :  { %1841 = vsyncpa [#allocation5], 1 }

</bundles_post_ra>
